<compile_context>
chip_gen: v6e
topology: v6e:2x2x1
jax: 0.10.0
libtpu: 0.0.40
codegen_flags: <defaults>
</compile_context>

<pallas_src>
import functools

import jax
import jax.numpy as jnp
import numpy as np
from jax.experimental import pallas as pl
from jax.experimental.pallas import tpu as pltpu


# ----------------------------- kernel helpers -----------------------------

def _gelu(x):
    # 0.5 * x * (1 + tanh(sqrt(2/pi) * (x + 0.044715 * x^3)))  -- matches module
    return 0.5 * x * (1.0 + jnp.tanh(jnp.sqrt(2.0 / jnp.pi) * (x + 0.044715 * x ** 3)))


def _layernorm(x, scale, shift, eps=1e-5):
    # single pass: mean and E[x^2] together, var = E[x^2] - mean^2 (unbiased=False)
    mean = jnp.mean(x, axis=-1, keepdims=True)
    msq = jnp.mean(x * x, axis=-1, keepdims=True)
    var = msq - mean * mean
    inv = jax.lax.rsqrt(var + eps)          # EUP rsqrt instead of sqrt + divide
    return scale * ((x - mean) * inv) + shift


# ------------------------------ Pallas kernel ------------------------------

def _transformer_block_kernel(num_heads,
                              x_ref, ln1_s_ref, ln1_b_ref,
                              wqkv_ref, wo_ref, bo_ref,
                              ln2_s_ref, ln2_b_ref,
                              w1_ref, b1_ref, w2_ref, b2_ref,
                              o_ref):
    x = x_ref[0]                                    # (T, E) f32, one batch element
    T, E = x.shape
    H = num_heads
    Dh = E // H

    # ---- LayerNorm 1 ----
    xn = _layernorm(x, ln1_s_ref[...], ln1_b_ref[...])

    # ---- fused QKV projection: one (T,E)x(E,3E) MXU op, bf16 in / f32 acc ----
    qkv = jnp.dot(xn.astype(jnp.bfloat16), wqkv_ref[...],
                  preferred_element_type=jnp.float32)            # (T, 3E)
    scale = 1.0 / jnp.sqrt(jnp.float32(Dh))
    q = (qkv[:, :E] * scale).reshape(T, H, Dh)                   # fold 1/sqrt(Dh) into q
    k = qkv[:, E:2 * E].reshape(T, H, Dh)
    v = qkv[:, 2 * E:].reshape(T, H, Dh)

    # ---- multi-head causal attention: one batched contraction over heads ----
    s = jnp.einsum('qhd,khd->hqk',
                   q.astype(jnp.bfloat16), k.astype(jnp.bfloat16),
                   preferred_element_type=jnp.float32)           # (H, T, T)

    # additive finite causal mask (avoids -inf arithmetic hazards)
    row = jax.lax.broadcasted_iota(jnp.int32, (T, T), 0)
    col = jax.lax.broadcasted_iota(jnp.int32, (T, T), 1)
    neg = jnp.where(col > row, jnp.float32(-1e30), jnp.float32(0.0))
    s = s + neg[None, :, :]

    # numerically-stable softmax; reciprocal on the EUP slot
    s = s - jnp.max(s, axis=-1, keepdims=True)
    p = jnp.exp(s)
    p = p * pl.reciprocal(jnp.sum(p, axis=-1, keepdims=True), approx=True)

    ctx = jnp.einsum('hqk,khd->qhd',
                     p.astype(jnp.bfloat16), v.astype(jnp.bfloat16),
                     preferred_element_type=jnp.float32).reshape(T, E)

    attn = jnp.dot(ctx.astype(jnp.bfloat16), wo_ref[...],
                   preferred_element_type=jnp.float32) + bo_ref[...]

    # first residual (dropout == identity)
    x1 = attn + x

    # ---- LayerNorm 2 + FeedForward ----
    x2 = _layernorm(x1, ln2_s_ref[...], ln2_b_ref[...])
    h1 = jnp.dot(x2.astype(jnp.bfloat16), w1_ref[...],
                 preferred_element_type=jnp.float32) + b1_ref[...]
    h1 = _gelu(h1)
    ff = jnp.dot(h1.astype(jnp.bfloat16), w2_ref[...],
                 preferred_element_type=jnp.float32) + b2_ref[...]

    # second residual: uses the ORIGINAL input (reference-code typo preserved)
    o_ref[0] = (ff + x).astype(o_ref.dtype)


# -------------------------------- wrapper ----------------------------------

def transformer_block(x, params, num_heads):
    """x: (B, T, E) float32; params: f32 weights, linear weights stored (in, out)."""
    (ln1_s, ln1_b, wq, wk, wv, wo, bo, ln2_s, ln2_b, w1, b1, w2, b2) = params
    B, T, E = x.shape
    Hd = w1.shape[1]

    # one-time weight prep: fuse QKV along the output dim and cast MXU weights to bf16
    wqkv = jnp.concatenate([wq, wk, wv], axis=1).astype(jnp.bfloat16)   # (E, 3E)
    wo_b = wo.astype(jnp.bfloat16)
    w1_b = w1.astype(jnp.bfloat16)
    w2_b = w2.astype(jnp.bfloat16)

    kernel = functools.partial(_transformer_block_kernel, num_heads)

    def full(shape):
        return pl.BlockSpec(shape, lambda b, _n=len(shape): (0,) * _n)

    in_specs = [
        pl.BlockSpec((1, T, E), lambda b: (b, 0, 0)),   # x
        full((1, E)), full((1, E)),                     # ln1 scale / shift (f32)
        full((E, 3 * E)),                               # fused Wqkv (bf16)
        full((E, E)), full((1, E)),                     # Wo (bf16), bo (f32)
        full((1, E)), full((1, E)),                     # ln2 scale / shift (f32)
        full((E, Hd)), full((1, Hd)),                   # W1 (bf16), b1 (f32)
        full((Hd, E)), full((1, E)),                    # W2 (bf16), b2 (f32)
    ]
    out_spec = pl.BlockSpec((1, T, E), lambda b: (b, 0, 0))

    return pl.pallas_call(
        kernel,
        out_shape=jax.ShapeDtypeStruct((B, T, E), x.dtype),
        grid_spec=pltpu.PrefetchScalarGridSpec(
            num_scalar_prefetch=0,
            grid=(B,),
            in_specs=in_specs,
            out_specs=out_spec,
        ),
        compiler_params=pltpu.CompilerParams(
            dimension_semantics=("parallel",),
            vmem_limit_bytes=64 * 1024 * 1024,
        ),
    )(x, ln1_s, ln1_b, wqkv, wo_b, bo, ln2_s, ln2_b, w1_b, b1, w2_b, b2)


# --------------------------- pure-JAX reference -----------------------------

def transformer_block_ref(x, params, num_heads):
    """Pure f32 reference matching the PyTorch module semantics (typo preserved)."""
    (ln1_s, ln1_b, wq, wk, wv, wo, bo, ln2_s, ln2_b, w1, b1, w2, b2) = params
    B, T, E = x.shape
    Dh = E // num_heads

    def ln(v, s, sh):
        m = v.mean(-1, keepdims=True)
        var = ((v - m) ** 2).mean(-1, keepdims=True)
        return s * ((v - m) / jnp.sqrt(var + 1e-5)) + sh

    xn = ln(x, ln1_s, ln1_b)
    q = (xn @ wq).reshape(B, T, num_heads, Dh).transpose(0, 2, 1, 3)
    k = (xn @ wk).reshape(B, T, num_heads, Dh).transpose(0, 2, 1, 3)
    v = (xn @ wv).reshape(B, T, num_heads, Dh).transpose(0, 2, 1, 3)
    s = jnp.einsum("bhtd,bhsd->bhts", q, k) / np.sqrt(Dh)
    mask = jnp.triu(jnp.ones((T, T), dtype=bool), 1)
    s = jnp.where(mask, -jnp.inf, s)
    p = jax.nn.softmax(s, axis=-1)
    ctx = jnp.einsum("bhts,bhsd->bhtd", p, v).transpose(0, 2, 1, 3).reshape(B, T, E)
    attn = ctx @ wo + bo
    x1 = attn + x
    x2 = ln(x1, ln2_s, ln2_b)
    h1 = _gelu(x2 @ w1 + b1)
    ff = h1 @ w2 + b2
    return ff + x                       # typo-preserving residual


# ---------------------------------- main ------------------------------------

if __name__ == "__main__":
    B, T, E, H = 2, 8, 32, 4            # batch, seq(context_length), emb_dim, n_heads
    Hd = 4 * E

    key = jax.random.PRNGKey(0)
    keys = jax.random.split(key, 10)

    x = jax.random.normal(keys[0], (B, T, E), dtype=jnp.float32)

    # deterministic parameter init (weights stored as (in, out); LN scale/shift = ones
    # exactly as in the module's __init__)
    wq = 0.02 * jax.random.normal(keys[1], (E, E), dtype=jnp.float32)
    wk = 0.02 * jax.random.normal(keys[2], (E, E), dtype=jnp.float32)
    wv = 0.02 * jax.random.normal(keys[3], (E, E), dtype=jnp.float32)
    wo = 0.02 * jax.random.normal(keys[4], (E, E), dtype=jnp.float32)
    bo = 0.02 * jax.random.normal(keys[5], (1, E), dtype=jnp.float32)
    w1 = 0.02 * jax.random.normal(keys[6], (E, Hd), dtype=jnp.float32)
    b1 = 0.02 * jax.random.normal(keys[7], (1, Hd), dtype=jnp.float32)
    w2 = 0.02 * jax.random.normal(keys[8], (Hd, E), dtype=jnp.float32)
    b2 = 0.02 * jax.random.normal(keys[9], (1, E), dtype=jnp.float32)
    ln1_s = jnp.ones((1, E), dtype=jnp.float32)
    ln1_b = jnp.ones((1, E), dtype=jnp.float32)
    ln2_s = jnp.ones((1, E), dtype=jnp.float32)
    ln2_b = jnp.ones((1, E), dtype=jnp.float32)

    params = (ln1_s, ln1_b, wq, wk, wv, wo, bo, ln2_s, ln2_b, w1, b1, w2, b2)

    out = transformer_block(x, params, num_heads=H)
    out = jax.block_until_ready(out)

    ref = jax.block_until_ready(transformer_block_ref(x, params, num_heads=H))
    # tolerance accounts for bf16 MXU inputs (f32 accumulate) vs. pure-f32 reference
    np.testing.assert_allclose(np.asarray(out), np.asarray(ref), rtol=2e-2, atol=2e-2)

    print("KERNEL_OK")
</pallas_src>

<mosaic_0001>
module attributes {stable_mosaic.version = 11 : i64} {
  func.func @_transformer_block_kernel(%arg0: i32, %arg1: memref<1x8x32xf32, #tpu.memory_space<vmem>>, %arg2: memref<1x32xf32, #tpu.memory_space<vmem>>, %arg3: memref<1x32xf32, #tpu.memory_space<vmem>>, %arg4: memref<32x96xbf16, #tpu.memory_space<vmem>>, %arg5: memref<32x32xbf16, #tpu.memory_space<vmem>>, %arg6: memref<1x32xf32, #tpu.memory_space<vmem>>, %arg7: memref<1x32xf32, #tpu.memory_space<vmem>>, %arg8: memref<1x32xf32, #tpu.memory_space<vmem>>, %arg9: memref<32x128xbf16, #tpu.memory_space<vmem>>, %arg10: memref<1x128xf32, #tpu.memory_space<vmem>>, %arg11: memref<128x32xbf16, #tpu.memory_space<vmem>>, %arg12: memref<1x32xf32, #tpu.memory_space<vmem>>, %arg13: memref<1x8x32xf32, #tpu.memory_space<vmem>>) attributes {dimension_semantics = [#tpu.dimension_semantics<parallel>], iteration_bounds = array<i64: 2>, scalar_prefetch = 0 : i64, scratch_operands = 0 : i64, tpu.core_type = #tpu.core_type<tc>, window_params = [{transform_indices = @transform_0, window_bounds = array<i64: 1, 8, 32>}, {pipeline_mode = #tpu.pipeline_mode<synchronous>, transform_indices = @transform_1, window_bounds = array<i64: 1, 32>}, {pipeline_mode = #tpu.pipeline_mode<synchronous>, transform_indices = @transform_2, window_bounds = array<i64: 1, 32>}, {pipeline_mode = #tpu.pipeline_mode<synchronous>, transform_indices = @transform_3, window_bounds = array<i64: 32, 96>}, {pipeline_mode = #tpu.pipeline_mode<synchronous>, transform_indices = @transform_4, window_bounds = array<i64: 32, 32>}, {pipeline_mode = #tpu.pipeline_mode<synchronous>, transform_indices = @transform_5, window_bounds = array<i64: 1, 32>}, {pipeline_mode = #tpu.pipeline_mode<synchronous>, transform_indices = @transform_6, window_bounds = array<i64: 1, 32>}, {pipeline_mode = #tpu.pipeline_mode<synchronous>, transform_indices = @transform_7, window_bounds = array<i64: 1, 32>}, {pipeline_mode = #tpu.pipeline_mode<synchronous>, transform_indices = @transform_8, window_bounds = array<i64: 32, 128>}, {pipeline_mode = #tpu.pipeline_mode<synchronous>, transform_indices = @transform_9, window_bounds = array<i64: 1, 128>}, {pipeline_mode = #tpu.pipeline_mode<synchronous>, transform_indices = @transform_10, window_bounds = array<i64: 128, 32>}, {pipeline_mode = #tpu.pipeline_mode<synchronous>, transform_indices = @transform_11, window_bounds = array<i64: 1, 32>}, {transform_indices = @transform_12, window_bounds = array<i64: 1, 8, 32>}]} {
    %c0 = arith.constant 0 : index
    %c0_0 = arith.constant 0 : index
    %c0_1 = arith.constant 0 : index
    %0 = vector.load %arg1[%c0, %c0_0, %c0_1] : memref<1x8x32xf32, #tpu.memory_space<vmem>>, vector<1x8x32xf32>
    %1 = vector.shape_cast %0 : vector<1x8x32xf32> to vector<8x32xf32>
    %c0_2 = arith.constant 0 : index
    %c0_3 = arith.constant 0 : index
    %2 = vector.load %arg2[%c0_2, %c0_3] : memref<1x32xf32, #tpu.memory_space<vmem>>, vector<1x32xf32>
    %c0_4 = arith.constant 0 : index
    %c0_5 = arith.constant 0 : index
    %3 = vector.load %arg3[%c0_4, %c0_5] : memref<1x32xf32, #tpu.memory_space<vmem>>, vector<1x32xf32>
    %cst = arith.constant dense<0.000000e+00> : vector<8xf32>
    %4 = vector.multi_reduction <add>, %1, %cst [1] : vector<8x32xf32> to vector<8xf32>
    %5 = vector.shape_cast %4 : vector<8xf32> to vector<8x1xf32>
    %cst_6 = arith.constant 3.200000e+01 : f32
    %6 = vector.broadcast %cst_6 : f32 to vector<8x1xf32>
    %7 = arith.divf %5, %6 : vector<8x1xf32>
    %8 = arith.mulf %1, %1 : vector<8x32xf32>
    %cst_7 = arith.constant dense<0.000000e+00> : vector<8xf32>
    %9 = vector.multi_reduction <add>, %8, %cst_7 [1] : vector<8x32xf32> to vector<8xf32>
    %10 = vector.shape_cast %9 : vector<8xf32> to vector<8x1xf32>
    %cst_8 = arith.constant 3.200000e+01 : f32
    %11 = vector.broadcast %cst_8 : f32 to vector<8x1xf32>
    %12 = arith.divf %10, %11 : vector<8x1xf32>
    %13 = arith.mulf %7, %7 : vector<8x1xf32>
    %14 = arith.subf %12, %13 : vector<8x1xf32>
    %cst_9 = arith.constant 9.99999974E-6 : f32
    %15 = vector.broadcast %cst_9 : f32 to vector<8x1xf32>
    %16 = arith.addf %14, %15 : vector<8x1xf32>
    %17 = math.rsqrt %16 : vector<8x1xf32>
    %18 = vector.broadcast %7 : vector<8x1xf32> to vector<8x32xf32>
    %19 = arith.subf %1, %18 : vector<8x32xf32>
    %20 = vector.broadcast %17 : vector<8x1xf32> to vector<8x32xf32>
    %21 = arith.mulf %19, %20 : vector<8x32xf32>
    %22 = vector.broadcast %2 : vector<1x32xf32> to vector<8x32xf32>
    %23 = arith.mulf %22, %21 : vector<8x32xf32>
    %24 = vector.broadcast %3 : vector<1x32xf32> to vector<8x32xf32>
    %25 = arith.addf %23, %24 : vector<8x32xf32>
    %26 = arith.truncf %25 : vector<8x32xf32> to vector<8x32xbf16>
    %c0_10 = arith.constant 0 : index
    %c0_11 = arith.constant 0 : index
    %27 = vector.load %arg4[%c0_10, %c0_11] : memref<32x96xbf16, #tpu.memory_space<vmem>>, vector<32x96xbf16>
    %cst_12 = arith.constant dense<0.000000e+00> : vector<8x96xf32>
    %28 = tpu.matmul %26, %27, %cst_12 {dimension_numbers = #tpu.dot_dimension_numbers<[1], [0], [0], [1], [0, 0, 1, 1], [], []>} : vector<8x32xbf16>, vector<32x96xbf16>, vector<8x96xf32> -> vector<8x96xf32>
    %cst_13 = arith.constant 8.000000e+00 : f32
    %29 = math.sqrt %cst_13 : f32
    %cst_14 = arith.constant 1.000000e+00 : f32
    %30 = arith.divf %cst_14, %29 : f32
    %31 = vector.extract_strided_slice %28 {offsets = [0, 0], sizes = [8, 32], strides = [1, 1]} : vector<8x96xf32> to vector<8x32xf32>
    %32 = vector.broadcast %30 : f32 to vector<8x32xf32>
    %33 = arith.mulf %31, %32 : vector<8x32xf32>
    %34 = vector.shape_cast %33 : vector<8x32xf32> to vector<8x4x8xf32>
    %35 = vector.extract_strided_slice %28 {offsets = [0, 32], sizes = [8, 32], strides = [1, 1]} : vector<8x96xf32> to vector<8x32xf32>
    %36 = vector.shape_cast %35 : vector<8x32xf32> to vector<8x4x8xf32>
    %37 = vector.extract_strided_slice %28 {offsets = [0, 64], sizes = [8, 32], strides = [1, 1]} : vector<8x96xf32> to vector<8x32xf32>
    %38 = vector.shape_cast %37 : vector<8x32xf32> to vector<8x4x8xf32>
    %39 = arith.truncf %34 : vector<8x4x8xf32> to vector<8x4x8xbf16>
    %40 = arith.truncf %36 : vector<8x4x8xf32> to vector<8x4x8xbf16>
    "tpu.trace_start"() <{level = 10 : i32, message = "qhd,khd->hqk"}> : () -> ()
    %cst_15 = arith.constant dense<0.000000e+00> : vector<4x8x8xf32>
    %41 = tpu.matmul %39, %40, %cst_15 {dimension_numbers = #tpu.dot_dimension_numbers<[2], [2], [0], [0], [0, 1, 0, 0, 1, 0], [1], [1]>} : vector<8x4x8xbf16>, vector<8x4x8xbf16>, vector<4x8x8xf32> -> vector<4x8x8xf32>
    "tpu.trace_stop"() : () -> ()
    %42 = tpu.iota {dimensions = array<i32: 0>} : vector<8x8xi32>
    %43 = tpu.iota {dimensions = array<i32: 1>} : vector<8x8xi32>
    %44 = arith.cmpi sgt, %43, %42 : vector<8x8xi32>
    %cst_16 = arith.constant -1.000000e+30 : f32
    %cst_17 = arith.constant 0.000000e+00 : f32
    %45 = vector.broadcast %cst_16 : f32 to vector<8x8xf32>
    %46 = vector.broadcast %cst_17 : f32 to vector<8x8xf32>
    %47 = arith.select %44, %45, %46 : vector<8x8xi1>, vector<8x8xf32>
    %48 = vector.shape_cast %47 : vector<8x8xf32> to vector<1x8x8xf32>
    %49 = vector.broadcast %48 : vector<1x8x8xf32> to vector<4x8x8xf32>
    %50 = arith.addf %41, %49 : vector<4x8x8xf32>
    %cst_18 = arith.constant dense<0xFF800000> : vector<4x8xf32>
    %51 = vector.multi_reduction <maximumf>, %50, %cst_18 [2] : vector<4x8x8xf32> to vector<4x8xf32>
    %52 = vector.shape_cast %51 : vector<4x8xf32> to vector<4x8x1xf32>
    %53 = vector.broadcast %52 : vector<4x8x1xf32> to vector<4x8x8xf32>
    %54 = arith.subf %50, %53 : vector<4x8x8xf32>
    %55 = math.exp %54 : vector<4x8x8xf32>
    %cst_19 = arith.constant dense<0.000000e+00> : vector<4x8xf32>
    %56 = vector.multi_reduction <add>, %55, %cst_19 [2] : vector<4x8x8xf32> to vector<4x8xf32>
    %57 = vector.shape_cast %56 : vector<4x8xf32> to vector<4x8x1xf32>
    %58 = tpu.reciprocal %57 {approx = true} : vector<4x8x1xf32> -> vector<4x8x1xf32>
    %59 = vector.broadcast %58 : vector<4x8x1xf32> to vector<4x8x8xf32>
    %60 = arith.mulf %55, %59 : vector<4x8x8xf32>
    %61 = arith.truncf %60 : vector<4x8x8xf32> to vector<4x8x8xbf16>
    %62 = arith.truncf %38 : vector<8x4x8xf32> to vector<8x4x8xbf16>
    "tpu.trace_start"() <{level = 10 : i32, message = "hqk,khd->qhd"}> : () -> ()
    %cst_20 = arith.constant dense<0.000000e+00> : vector<4x8x8xf32>
    %63 = tpu.matmul %62, %61, %cst_20 {dimension_numbers = #tpu.dot_dimension_numbers<[0], [2], [2], [1], [0, 1, 0, 2, 1, 1], [1], [0]>} : vector<8x4x8xbf16>, vector<4x8x8xbf16>, vector<4x8x8xf32> -> vector<4x8x8xf32>
    %64 = tpu.transpose %63, [2, 0, 1] : vector<4x8x8xf32> -> vector<8x4x8xf32>
    "tpu.trace_stop"() : () -> ()
    %65 = vector.shape_cast %64 : vector<8x4x8xf32> to vector<8x32xf32>
    %66 = arith.truncf %65 : vector<8x32xf32> to vector<8x32xbf16>
    %c0_21 = arith.constant 0 : index
    %c0_22 = arith.constant 0 : index
    %67 = vector.load %arg5[%c0_21, %c0_22] : memref<32x32xbf16, #tpu.memory_space<vmem>>, vector<32x32xbf16>
    %cst_23 = arith.constant dense<0.000000e+00> : vector<8x32xf32>
    %68 = tpu.matmul %66, %67, %cst_23 {dimension_numbers = #tpu.dot_dimension_numbers<[1], [0], [0], [1], [0, 0, 1, 1], [], []>} : vector<8x32xbf16>, vector<32x32xbf16>, vector<8x32xf32> -> vector<8x32xf32>
    %c0_24 = arith.constant 0 : index
    %c0_25 = arith.constant 0 : index
    %69 = vector.load %arg6[%c0_24, %c0_25] : memref<1x32xf32, #tpu.memory_space<vmem>>, vector<1x32xf32>
    %70 = vector.broadcast %69 : vector<1x32xf32> to vector<8x32xf32>
    %71 = arith.addf %68, %70 : vector<8x32xf32>
    %72 = arith.addf %71, %1 : vector<8x32xf32>
    %c0_26 = arith.constant 0 : index
    %c0_27 = arith.constant 0 : index
    %73 = vector.load %arg7[%c0_26, %c0_27] : memref<1x32xf32, #tpu.memory_space<vmem>>, vector<1x32xf32>
    %c0_28 = arith.constant 0 : index
    %c0_29 = arith.constant 0 : index
    %74 = vector.load %arg8[%c0_28, %c0_29] : memref<1x32xf32, #tpu.memory_space<vmem>>, vector<1x32xf32>
    %cst_30 = arith.constant dense<0.000000e+00> : vector<8xf32>
    %75 = vector.multi_reduction <add>, %72, %cst_30 [1] : vector<8x32xf32> to vector<8xf32>
    %76 = vector.shape_cast %75 : vector<8xf32> to vector<8x1xf32>
    %cst_31 = arith.constant 3.200000e+01 : f32
    %77 = vector.broadcast %cst_31 : f32 to vector<8x1xf32>
    %78 = arith.divf %76, %77 : vector<8x1xf32>
    %79 = arith.mulf %72, %72 : vector<8x32xf32>
    %cst_32 = arith.constant dense<0.000000e+00> : vector<8xf32>
    %80 = vector.multi_reduction <add>, %79, %cst_32 [1] : vector<8x32xf32> to vector<8xf32>
    %81 = vector.shape_cast %80 : vector<8xf32> to vector<8x1xf32>
    %cst_33 = arith.constant 3.200000e+01 : f32
    %82 = vector.broadcast %cst_33 : f32 to vector<8x1xf32>
    %83 = arith.divf %81, %82 : vector<8x1xf32>
    %84 = arith.mulf %78, %78 : vector<8x1xf32>
    %85 = arith.subf %83, %84 : vector<8x1xf32>
    %cst_34 = arith.constant 9.99999974E-6 : f32
    %86 = vector.broadcast %cst_34 : f32 to vector<8x1xf32>
    %87 = arith.addf %85, %86 : vector<8x1xf32>
    %88 = math.rsqrt %87 : vector<8x1xf32>
    %89 = vector.broadcast %78 : vector<8x1xf32> to vector<8x32xf32>
    %90 = arith.subf %72, %89 : vector<8x32xf32>
    %91 = vector.broadcast %88 : vector<8x1xf32> to vector<8x32xf32>
    %92 = arith.mulf %90, %91 : vector<8x32xf32>
    %93 = vector.broadcast %73 : vector<1x32xf32> to vector<8x32xf32>
    %94 = arith.mulf %93, %92 : vector<8x32xf32>
    %95 = vector.broadcast %74 : vector<1x32xf32> to vector<8x32xf32>
    %96 = arith.addf %94, %95 : vector<8x32xf32>
    %97 = arith.truncf %96 : vector<8x32xf32> to vector<8x32xbf16>
    %c0_35 = arith.constant 0 : index
    %c0_36 = arith.constant 0 : index
    %98 = vector.load %arg9[%c0_35, %c0_36] : memref<32x128xbf16, #tpu.memory_space<vmem>>, vector<32x128xbf16>
    %cst_37 = arith.constant dense<0.000000e+00> : vector<8x128xf32>
    %99 = tpu.matmul %97, %98, %cst_37 {dimension_numbers = #tpu.dot_dimension_numbers<[1], [0], [0], [1], [0, 0, 1, 1], [], []>} : vector<8x32xbf16>, vector<32x128xbf16>, vector<8x128xf32> -> vector<8x128xf32>
    %c0_38 = arith.constant 0 : index
    %c0_39 = arith.constant 0 : index
    %100 = vector.load %arg10[%c0_38, %c0_39] : memref<1x128xf32, #tpu.memory_space<vmem>>, vector<1x128xf32>
    %101 = vector.broadcast %100 : vector<1x128xf32> to vector<8x128xf32>
    %102 = arith.addf %99, %101 : vector<8x128xf32>
    %cst_40 = arith.constant 5.000000e-01 : f32
    %103 = vector.broadcast %cst_40 : f32 to vector<8x128xf32>
    %104 = arith.mulf %103, %102 : vector<8x128xf32>
    %cst_41 = arith.constant 0.636619746 : f32
    %105 = math.sqrt %cst_41 : f32
    %106 = arith.mulf %102, %102 : vector<8x128xf32>
    %107 = arith.mulf %102, %106 : vector<8x128xf32>
    %cst_42 = arith.constant 4.471500e-02 : f32
    %108 = vector.broadcast %cst_42 : f32 to vector<8x128xf32>
    %109 = arith.mulf %108, %107 : vector<8x128xf32>
    %110 = arith.addf %102, %109 : vector<8x128xf32>
    %111 = vector.broadcast %105 : f32 to vector<8x128xf32>
    %112 = arith.mulf %111, %110 : vector<8x128xf32>
    %113 = math.tanh %112 : vector<8x128xf32>
    %cst_43 = arith.constant 1.000000e+00 : f32
    %114 = vector.broadcast %cst_43 : f32 to vector<8x128xf32>
    %115 = arith.addf %114, %113 : vector<8x128xf32>
    %116 = arith.mulf %104, %115 : vector<8x128xf32>
    %117 = arith.truncf %116 : vector<8x128xf32> to vector<8x128xbf16>
    %c0_44 = arith.constant 0 : index
    %c0_45 = arith.constant 0 : index
    %118 = vector.load %arg11[%c0_44, %c0_45] : memref<128x32xbf16, #tpu.memory_space<vmem>>, vector<128x32xbf16>
    %cst_46 = arith.constant dense<0.000000e+00> : vector<8x32xf32>
    %119 = tpu.matmul %117, %118, %cst_46 {dimension_numbers = #tpu.dot_dimension_numbers<[1], [0], [0], [1], [0, 0, 1, 1], [], []>} : vector<8x128xbf16>, vector<128x32xbf16>, vector<8x32xf32> -> vector<8x32xf32>
    %c0_47 = arith.constant 0 : index
    %c0_48 = arith.constant 0 : index
    %120 = vector.load %arg12[%c0_47, %c0_48] : memref<1x32xf32, #tpu.memory_space<vmem>>, vector<1x32xf32>
    %121 = vector.broadcast %120 : vector<1x32xf32> to vector<8x32xf32>
    %122 = arith.addf %119, %121 : vector<8x32xf32>
    %123 = arith.addf %122, %1 : vector<8x32xf32>
    %c0_49 = arith.constant 0 : index
    %c0_50 = arith.constant 0 : index
    %c0_51 = arith.constant 0 : index
    %124 = vector.load %arg13[%c0_49, %c0_50, %c0_51] : memref<1x8x32xf32, #tpu.memory_space<vmem>>, vector<1x8x32xf32>
    %125 = vector.shape_cast %124 : vector<1x8x32xf32> to vector<8x32xf32>
    %126 = vector.shape_cast %123 : vector<8x32xf32> to vector<1x8x32xf32>
    tpu.vector_store %arg13[%c0_49, %c0_50, %c0_51], %126 {strides = array<i32>} : memref<1x8x32xf32, #tpu.memory_space<vmem>>, vector<1x8x32xf32>,
    return
  }
  func.func @transform_0(%arg0: i32) -> (i32, i32, i32) {
    %c0_i32 = arith.constant 0 : i32
    %c0_i32_0 = arith.constant 0 : i32
    %c0_i32_1 = arith.constant 0 : i32
    return %arg0, %c0_i32, %c0_i32_0 : i32, i32, i32
  }
  func.func @transform_1(%arg0: i32) -> (i32, i32) {
    %c0_i32 = arith.constant 0 : i32
    %c0_i32_0 = arith.constant 0 : i32
    %c0_i32_1 = arith.constant 0 : i32
    return %c0_i32, %c0_i32_0 : i32, i32
  }
  func.func @transform_2(%arg0: i32) -> (i32, i32) {
    %c0_i32 = arith.constant 0 : i32
    %c0_i32_0 = arith.constant 0 : i32
    %c0_i32_1 = arith.constant 0 : i32
    return %c0_i32, %c0_i32_0 : i32, i32
  }
  func.func @transform_3(%arg0: i32) -> (i32, i32) {
    %c0_i32 = arith.constant 0 : i32
    %c0_i32_0 = arith.constant 0 : i32
    %c0_i32_1 = arith.constant 0 : i32
    return %c0_i32, %c0_i32_0 : i32, i32
  }
  func.func @transform_4(%arg0: i32) -> (i32, i32) {
    %c0_i32 = arith.constant 0 : i32
    %c0_i32_0 = arith.constant 0 : i32
    %c0_i32_1 = arith.constant 0 : i32
    return %c0_i32, %c0_i32_0 : i32, i32
  }
  func.func @transform_5(%arg0: i32) -> (i32, i32) {
    %c0_i32 = arith.constant 0 : i32
    %c0_i32_0 = arith.constant 0 : i32
    %c0_i32_1 = arith.constant 0 : i32
    return %c0_i32, %c0_i32_0 : i32, i32
  }
  func.func @transform_6(%arg0: i32) -> (i32, i32) {
    %c0_i32 = arith.constant 0 : i32
    %c0_i32_0 = arith.constant 0 : i32
    %c0_i32_1 = arith.constant 0 : i32
    return %c0_i32, %c0_i32_0 : i32, i32
  }
  func.func @transform_7(%arg0: i32) -> (i32, i32) {
    %c0_i32 = arith.constant 0 : i32
    %c0_i32_0 = arith.constant 0 : i32
    %c0_i32_1 = arith.constant 0 : i32
    return %c0_i32, %c0_i32_0 : i32, i32
  }
  func.func @transform_8(%arg0: i32) -> (i32, i32) {
    %c0_i32 = arith.constant 0 : i32
    %c0_i32_0 = arith.constant 0 : i32
    %c0_i32_1 = arith.constant 0 : i32
    return %c0_i32, %c0_i32_0 : i32, i32
  }
  func.func @transform_9(%arg0: i32) -> (i32, i32) {
    %c0_i32 = arith.constant 0 : i32
    %c0_i32_0 = arith.constant 0 : i32
    %c0_i32_1 = arith.constant 0 : i32
    return %c0_i32, %c0_i32_0 : i32, i32
  }
  func.func @transform_10(%arg0: i32) -> (i32, i32) {
    %c0_i32 = arith.constant 0 : i32
    %c0_i32_0 = arith.constant 0 : i32
    %c0_i32_1 = arith.constant 0 : i32
    return %c0_i32, %c0_i32_0 : i32, i32
  }
  func.func @transform_11(%arg0: i32) -> (i32, i32) {
    %c0_i32 = arith.constant 0 : i32
    %c0_i32_0 = arith.constant 0 : i32
    %c0_i32_1 = arith.constant 0 : i32
    return %c0_i32, %c0_i32_0 : i32, i32
  }
  func.func @transform_12(%arg0: i32) -> (i32, i32, i32) {
    %c0_i32 = arith.constant 0 : i32
    %c0_i32_0 = arith.constant 0 : i32
    %c0_i32_1 = arith.constant 0 : i32
    return %arg0, %c0_i32, %c0_i32_0 : i32, i32, i32
  }
}

</mosaic_0001>

<bundles_post_ra>
// kernel: tpu_custom_call.1
= control target key start
LH: loop header
LB: loop body
LE: loop exit
PB: predicated region body
PF: predicated region fallthrough
CT: control target
= control target key end

     0   :  { %s3568_s0 = inlined_call_operand.vmem [shape: f32[2,8,32], index: 0, kind: input, shape index: {}]   ;;  %s3569_s1 = inlined_call_operand.vmem [shape: f32[1,32], index: 1, kind: input, shape index: {}]   ;;  %s3570_s2 = inlined_call_operand.vmem [shape: f32[1,32], index: 2, kind: input, shape index: {}]   ;;  %s3571_s3 = inlined_call_operand.vmem [shape: bf16[32,96], index: 3, kind: input, shape index: {}]   ;;  %s3572_s4 = inlined_call_operand.vmem [shape: bf16[32,32], index: 4, kind: input, shape index: {}]   ;;  %s3573_s5 = inlined_call_operand.vmem [shape: f32[1,32], index: 5, kind: input, shape index: {}]   ;;  %s3574_s6 = inlined_call_operand.vmem [shape: f32[1,32], index: 6, kind: input, shape index: {}]   ;;  %s3575_s7 = inlined_call_operand.vmem [shape: f32[1,32], index: 7, kind: input, shape index: {}]   ;;  %s3576_s8 = inlined_call_operand.vmem [shape: bf16[32,128], index: 8, kind: input, shape index: {}]   ;;  %s3577_s9 = inlined_call_operand.vmem [shape: f32[1,128], index: 9, kind: input, shape index: {}]   ;;  %s3578_s10 = inlined_call_operand.vmem [shape: bf16[128,32], index: 10, kind: input, shape index: {}]   ;;  %s3579_s11 = inlined_call_operand.vmem [shape: f32[1,32], index: 11, kind: input, shape index: {}]   ;;  %s3580_s12 = inlined_call_operand.hbm [shape: f32[2,8,32], index: 12, kind: output, shape index: {}]  }
   0x1   :  { %3581 = sst [smem:[#allocation5_spill]] %s3568_s0 }
   0x2   :  { %3582 = sst [smem:[#allocation6_spill]] %s3569_s1 }
   0x3   :  { %17 = vsyncpa [#allocation3], 0 }
   0x4   :  { %19 = vsyncpa [#allocation3 + $0x1], 0  ;;  %s3143_s21 = smov 0   ;;  %s3145_s22 = smov 0  }
   0x5   :  { %s3147_s23 = smov 0   ;;  %s3149_s24 = smov 0  }
   0x6 LB: > { %s3164_s25 = sadd.s32 4294967295, %s3062_s24   ;;  %s2739_s26 = sadd.s32 4294967294, %s3062_s24   ;;  %s3062_s24 = sphi %s3149_s24, %s3590_s24   ;;  %s3058_s23 = sphi %s3147_s23, %s3589_s23   ;;  %s3054_s22 = sphi %s3145_s22, %s3588_s22   ;;  %s3050_s21 = sphi %s3143_s21, %s3587_s21  }
   0x7   : > { %s3168_s27 = sadd.s32 1, %s3062_s24   ;;  %s289_s28 = sadd.s32 1, %s3058_s23 }
   0x8   : > { %s286_s29 = ssub.s32 %s3062_s24, %s3168_s27  ;;  %p299_p0 = scmp.ne.s32.totalorder %s3058_s23, %s3054_s22 }
   0x9   : > { %p287_p1 = scmp.eq.s32.totalorder %s286_s29, 0  ;;  %p300_p2 = scmp.eq.s32.totalorder %s3164_s25, 1 }
   0xa   : > { %p305_p3 = scmp.ne.s32.totalorder %s3054_s22, %s3050_s21  ;;  %p306_p4 = scmp.eq.s32.totalorder %s2739_s26, 1 }
   0xb   : > { %s3179_s30 = scalar_select %p287_p1, %s3058_s23, %s289_s28  }
   0xc   : > { %p3181_p5 = por %p300_p2, %p299_p0  ;;  %p3185_p6 = por %p306_p4, %p305_p3 }
   0xd   : > { %p2742_p7 = scmp.ge.s32.totalorder %s3062_s24, 1  ;;  %p364_p8 = scmp.lt.s32.totalorder %s3062_s24, 3 }
   0xf   : > { %p365_p9 = pnand %p2742_p7, %p364_p8 }
  0x10   : > { %p405_p10 = scmp.lt.s32.totalorder (!%p365_p9), %s3164_s25, 1  ;;  %s3585_s0 = sld [smem:[#allocation5_spill]] (!%p365_p9) }
  0x11   : > { %368 = sbr.rel (%p365_p9) target bundleno = 2823 (0xb07), region = 68  ;;  %s3586_s1 = sld [smem:[#allocation6_spill]] (!%p365_p9) }
  0x12   : > { %s3066_s20 = smov (!%p365_p9), 104   ;;  %s3067_s26 = smov (!%p365_p9), 120  }
  0x13   : > { %s3068_s28 = smov (!%p365_p9), 112   ;;  %s3069_s29 = smov (!%p365_p9), 96  }
  0x14   : > { %s3077_s18 = smov (!%p365_p9), [#allocation2]  }
  0x16   : > { %s406_s15 = scalar_select %p405_p10, %s3164_s25, 1  ;;  %vm413_vm0 = vcmask 261120   ;;  %v2965_v4 = vld [vmem:[%s3571_s3 + $0x8] sm:$0xff]   ;;  %v3064_v5 = vmov 0.0   ;;  %vm3065_vm1 = vmmov 0   ;;  %v2966_v6 = vld [vmem:[%s3571_s3] sm:$0xff]   ;;  %v520_v33 = vlaneseq }
  0x17   : > { %2821 = vmatprep.subr.bf16.mxu1 %v3064_v5  ;;  %2825 = vmatprep.mubr.msk.bf16.mxu1 %vm3065_vm1, %v3064_v5  ;;  %v2745_v16 = vld [vmem:[%s3586_s1] ss:$0 sm:$0xff]  ;;  %v3070_v31 = vmov 1983009808   ;;  %v3071_v37 = vmov 1934713408  }
  0x18   : > { %s2744_s16 = sshll.u32 %s406_s15, 3  ;;  %2822 = vmatpush3.bf16.msra.mxu1 %v2965_v4  ;;  %2841 = vmatprep.subr.bf16.mxu0 %v3064_v5  ;;  %v2746_v18 = vld [vmem:[%s3570_s2] ss:$0 sm:$0xff]  ;;  %v518_v32 = vunpack.c.l.s4 %v3070_v31  ;;  %v3246_v36 = vshrl.u32 %v520_v33, 7  ;;  %v550_v38 = vunpack.c.l.s4 %v3071_v37  ;;  %s3073_s15 = smov 64   ;;  %vm1256_vm2 = vcmask 1043456  }
  0x19   : > { %s3196_s19 = scalar_lea.vmem %s3585_s0, %s2744_s16  ;;  %2823 = vmatprep.subr.bf16.mxu1 %v3064_v5  ;;  %2843 = vmatprep.mubr.msk.bf16.mxu0 %vm3065_vm1, %v3064_v5  ;;  %vm1252_vm3 = vcmask 64512   ;;  %vm2373_vm5 = vcmask 130048   ;;  %vm2375_vm6 = vcmask 195584   ;;  %s402_s16 = sand.u32 1, %s3054_s22  }
  0x1a   : > { %v410_v0 = vld [vmem:[%s3196_s19] sm:$0xff]  ;;  %v519_v35 = vunpack.c.0.s8 %v518_v32  ;;  %v551_v42 = vunpack.c.0.s8 %v550_v38  ;;  %s2743_s17 = sshll.u32 %s402_s16, 3 }
  0x1b   : > { %v414_v1 = vsel %vm413_vm0, %v410_v0, 0.0  ;;  %v419_v2 = vmul.f32 %v410_v0, %v410_v0 }
  0x1c   : > { %415 = vadd.xlane.f32.xlu0 %v414_v1  ;;  %2824 = vmatpush3.bf16.msra.mxu1 %v2966_v6  ;;  %v3249_v40 = vsub.s32 %v519_v35, %v3246_v36  ;;  %v3255_v50 = vsub.s32 %v551_v42, %v3246_v36 }
  0x1d   : > { %v420_v3 = vsel %vm413_vm0, %v419_v2, 0.0  ;;  %2829 = vmatprep.subr.bf16.mxu1 %v3064_v5 }
  0x20   : > { %421 = vadd.xlane.f32.xlu0 %v420_v3 }
  0xa5   : > { %v416_v7 = vpop.xlane.xlu0 %415 }
  0xa6   : > { %v418_v8 = vmul.f32 0.03125, %v416_v7 }
  0xa8   : > { %v424_v10 = vmul.f32 %v418_v8, %v418_v8  ;;  %v428_v14 = vsub.f32 %v410_v0, %v418_v8 }
  0xa9   : > { %v422_v9 = vpop.xlane.xlu0 %421 }
  0xaa   : > { %v423_v11 = vmul.f32 0.03125, %v422_v9 }
  0xac   : > { %v425_v12 = vsub.f32 %v423_v11, %v424_v10 }
  0xae   : > { %v426_v13 = vadd.f32 1e-05, %v425_v12 }
  0xb0   : > { %2979 = vrsqrt.f32 %v426_v13 }
  0xbd   : > { %v2980_v15 = vpop.eup %2979 }
  0xbe   : > { %v429_v17 = vmul.f32 %v2980_v15, %v428_v14 }
  0xc0   : > { %v436_v19 = vmul.f32 %v2745_v16, %v429_v17 }
  0xc2   : > { %v443_v20 = vadd.f32 %v2746_v18, %v436_v19 }
  0xc4   : > { %v444_v21 = vpack.c.bf16 %v443_v20, %v443_v20 }
  0xc6   : > { %2826 = vmatmul.mubr.msk.bf16.vlgmr.msra.gmra.mxu1 %vm413_vm0, %v444_v21 }
  0xc7   : > { %2831 = vmatprep.mubr.msk.bf16.mxu1 %vm3065_vm1, %v3064_v5 }
 0x186   : > { %v3224_v22 = vpop.f32.mrf.mxu1 }
 0x187   : > { %588 = vrot.lane.b32.xlu0 %v3224_v22, %s3066_s20  ;;  %584 = vrot.lane.b32.xlu1 %v3224_v22, %s3067_s26  ;;  %v3242_v29 = vmul.f32 0.35355338, %v3224_v22 }
 0x188   : > { %v2827_v23 = vpop.f32.mrf.mxu1 }
 0x18a   : > { %v501_v24 = vpop.f32.mrf.mxu1 }
 0x18b   : > { %586 = vrot.lane.b32.xlu1 %v3224_v22, %s3068_s28 }
 0x18c   : > { %v2828_v25 = vpop.f32.mrf.mxu1 }
 0x18f   : > { %590 = vrot.lane.b32.xlu1 %v3224_v22, %s3069_s29 }
 0x1f9   : > { %v3232_v26 = vpop.permute.xlu1 %584  ;;  %v3238_v28 = vpop.permute.xlu0 %588 }
 0x1fa   : > { %592 = vrot.lane.b32.xlu1 %v3232_v26, %s3069_s29 }
 0x1fd   : > { %v3235_v27 = vpop.permute.xlu1 %586 }
 0x1fe   : > { %594 = vrot.lane.b32.xlu1 %v3235_v27, %s3069_s29 }
 0x201   : > { %v591_v30 = vpop.permute.xlu1 %590 }
 0x202   : > { %596 = vrot.lane.b32.xlu1 %v3238_v28, %s3069_s29  ;;  %s3076_s29 = smov 24  }
 0x206   : > { %506 = vrot.lane.b32.xlu1 %v3242_v29, %s3067_s26  ;;  %s3074_s26 = smov 16  }
 0x26c   : > { %v593_v34 = vpop.permute.xlu1 %592 }
 0x270   : > { %v595_v39 = vpop.permute.xlu1 %594 }
 0x271   : > { %v602_v41 = vcombine.low %v591_v30, %v595_v39  ;;  %v603_v44 = vcombine.high %v591_v30, %v595_v39 }
 0x273   : > { %v610_v47 = vrot.slane %v602_v41, %v3249_v40  ;;  %v617_v51 = vrot.slane %v603_v44, %v3249_v40 }
 0x274   : > { %v597_v43 = vpop.permute.xlu1 %596 }
 0x275   : > { %v618_v45 = vcombine.low %v593_v34, %v597_v43  ;;  %v619_v46 = vcombine.high %v593_v34, %v597_v43 }
 0x277   : > { %v626_v48 = vrot.slane %v618_v45, %v3249_v40  ;;  %v633_v49 = vrot.slane %v619_v46, %v3249_v40  ;;  %v3072_v46 = vmov 0  }
 0x278   : > { %v3270_v9 = vpop.permute.xlu1 %506 }
 0x279   : > { %v634_v52 = vcombine.low %v610_v47, %v626_v48  ;;  %v635_v53 = vcombine.high %v610_v47, %v626_v48  ;;  %v650_v56 = vcombine.low %v617_v51, %v633_v49  ;;  %v651_v62 = vcombine.high %v617_v51, %v633_v49 }
 0x27b   : > { %v642_v54 = vrot.slane %v634_v52, %v3255_v50  ;;  %v649_v55 = vrot.slane %v635_v53, %v3255_v50  ;;  %v658_v61 = vrot.slane %v650_v56, %v3255_v50  ;;  %v665_v2 = vrot.slane %v651_v62, %v3255_v50 }
 0x27d   : > { %v758_v57 = vpack.c.bf16 %v642_v54, %v642_v54  ;;  %v666_v58 = vcombine.high %v642_v54, %v3064_v5  ;;  %v667_v60 = vcombine.high %v649_v55, %v3064_v5  ;;  %v760_v63 = vpack.c.bf16 %v649_v55, %v649_v55 }
 0x27e   : > { %v668_v1 = vcombine.high %v658_v61, %v3064_v5  ;;  %v762_v3 = vpack.c.bf16 %v658_v61, %v658_v61  ;;  %v669_v6 = vcombine.high %v665_v2, %v3064_v5  ;;  %v764_v7 = vpack.c.bf16 %v665_v2, %v665_v2 }
 0x27f   : > { %834 = vxpose.xlu1.c.b16.start.end [1/1] (short) (narrow) %v758_v57, 16  ;;  %v759_v59 = vpack.c.bf16 %v666_v58, %v666_v58  ;;  %v761_v0 = vpack.c.bf16 %v667_v60, %v667_v60 }
 0x280   : > { %v763_v4 = vpack.c.bf16 %v668_v1, %v668_v1  ;;  %v765_v8 = vpack.c.bf16 %v669_v6, %v669_v6 }
 0x281   : > { %850 = vxpose.xlu0.c.b16.start.end [1/1] (short) (narrow) %v759_v59, 16 }
 0x283   : > { %866 = vxpose.xlu1.c.b16.start.end [1/1] (short) (narrow) %v760_v63, 16 }
 0x285   : > { %882 = vxpose.xlu0.c.b16.start.end [1/1] (short) (narrow) %v761_v0, 16 }
 0x287   : > { %898 = vxpose.xlu1.c.b16.start.end [1/1] (short) (narrow) %v762_v3, 16 }
 0x289   : > { %914 = vxpose.xlu0.c.b16.start.end [1/1] (short) (narrow) %v763_v4, 16 }
 0x28b   : > { %930 = vxpose.xlu1.c.b16.start.end [1/1] (short) (narrow) %v764_v7, 16 }
 0x28d   : > { %946 = vxpose.xlu0.c.b16.start.end [1/1] (short) (narrow) %v765_v8, 16 }
 0x28f   : > { %512 = vrot.lane.b32.xlu1 %v3242_v29, %s3066_s20  ;;  %s3006_s20 = sshll.u32 %s3077_s18, 4  ;;  %s3007_s20 = int_to_ptr.vmem [resolvable:$false] %s3006_s20 }
 0x296   : > { %509 = vrot.lane.b32.xlu0 %v3242_v29, %s3068_s28  ;;  %s3075_s28 = smov 8  }
 0x2e1   : > { %v842_v10 = vpop.trf.xlu1 }
 0x2e3   : > { %v858_v11 = vpop.trf.xlu0 }
 0x2e5   : > { %v874_v12 = vpop.trf.xlu1 }
 0x2e7   : > { %v890_v13 = vpop.trf.xlu0 }
 0x2e9   : > { %v906_v14 = vpop.trf.xlu1 }
 0x2ea   : > { %v962_v16 = vcombine.low %v842_v10, %v906_v14 }
 0x2eb   : > { %v922_v15 = vpop.trf.xlu0 }
 0x2ec   : > { %v996_v18 = vcombine.low %v858_v11, %v922_v15  ;;  %v969_v21 = vrot.slane %v962_v16, %v3249_v40 }
 0x2ed   : > { %v938_v17 = vpop.trf.xlu1 }
 0x2ee   : > { %v970_v19 = vcombine.low %v874_v12, %v938_v17  ;;  %v1003_v25 = vrot.slane %v996_v18, %v3249_v40 }
 0x2ef   : > { %v954_v20 = vpop.trf.xlu0 }
 0x2f0   : > { %v977_v23 = vrot.slane %v970_v19, %v3249_v40  ;;  %v1004_v24 = vcombine.low %v890_v13, %v954_v20 }
 0x2f2   : > { %v978_v30 = vcombine.low %v969_v21, %v977_v23  ;;  %v979_v31 = vcombine.high %v969_v21, %v977_v23  ;;  %v1011_v32 = vrot.slane %v1004_v24, %v3249_v40 }
 0x2f4   : > { %v1012_v34 = vcombine.low %v1003_v25, %v1011_v32  ;;  %v1013_v35 = vcombine.high %v1003_v25, %v1011_v32  ;;  %v986_v37 = vrot.slane %v978_v30, %v3255_v50  ;;  %v993_v38 = vrot.slane %v979_v31, %v3255_v50 }
 0x2f6   : > { %v1020_v39 = vrot.slane %v1012_v34, %v3255_v50  ;;  %v1027_v41 = vrot.slane %v1013_v35, %v3255_v50  ;;  %v1034_v48 = vshrl.u32 %v986_v37, 16  ;;  %v1050_v49 = vshrl.u32 %v993_v38, 16 }
 0x2f7   : > { %v994_v51 = vcombine.high %v986_v37, %v3072_v46  ;;  %v995_v57 = vcombine.high %v993_v38, %v3072_v46 }
 0x2f8   : > { %v1048_v42 = vpack.i.b16 %v1027_v41, %v993_v38  ;;  %v1032_v43 = vpack.i.b16 %v1020_v39, %v986_v37  ;;  %v1035_v44 = vshrl.u32 %v1020_v39, 16  ;;  %v1051_v45 = vshrl.u32 %v1027_v41, 16 }
 0x2f9   : > { %v1028_v47 = vcombine.high %v1020_v39, %v3072_v46  ;;  %v1029_v55 = vcombine.high %v1027_v41, %v3072_v46  ;;  %v1042_v56 = vshrl.u32 %v994_v51, 16  ;;  %v1058_v61 = vshrl.u32 %v995_v57, 16 }
 0x2fa   : > { %1126 = vxpose.xlu0.c.b16.start.end [1/1] (short) (narrow) %v1048_v42, 16  ;;  %1062 = vxpose.xlu1.c.b16.start.end [1/1] (short) (narrow) %v1032_v43, 16  ;;  %v1036_v52 = vpack.i.b16 %v1035_v44, %v1034_v48  ;;  %v1052_v53 = vpack.i.b16 %v1051_v45, %v1050_v49 }
 0x2fb   : > { %v1043_v54 = vshrl.u32 %v1028_v47, 16  ;;  %v1040_v59 = vpack.i.b16 %v1028_v47, %v994_v51  ;;  %v1059_v60 = vshrl.u32 %v1029_v55, 16  ;;  %v1056_v63 = vpack.i.b16 %v1029_v55, %v995_v57 }
 0x2fd   : > { %v1044_v58 = vpack.i.b16 %v1043_v54, %v1042_v56  ;;  %v1060_v62 = vpack.i.b16 %v1059_v60, %v1058_v61 }
 0x2fe   : > { %1078 = vxpose.xlu0.c.b16.start.end [1/1] (short) (narrow) %v1036_v52, 16  ;;  %1142 = vxpose.xlu1.c.b16.start.end [1/1] (short) (narrow) %v1052_v53, 16 }
 0x301   : > { %v513_v1 = vpop.permute.xlu1 %512 }
 0x302   : > { %1110 = vxpose.xlu1.c.b16.start.end [1/1] (short) (narrow) %v1044_v58, 16  ;;  %1094 = vxpose.xlu0.c.b16.start.end [1/1] (short) (narrow) %v1040_v59, 16  ;;  %v531_v4 = vcombine.low %v3270_v9, %v513_v1  ;;  %v532_v6 = vcombine.high %v3270_v9, %v513_v1 }
 0x304   : > { %v539_v10 = vrot.slane %v531_v4, %v3249_v40 }
 0x306   : > { %1174 = vxpose.xlu1.c.b16.start.end [1/1] (short) (narrow) %v1060_v62, 16  ;;  %1158 = vxpose.xlu0.c.b16.start.end [1/1] (short) (narrow) %v1056_v63, 16 }
 0x308   : > { %v510_v0 = vpop.permute.xlu0 %509 }
 0x309   : > { %v515_v2 = vcombine.low %v3242_v29, %v510_v0  ;;  %v516_v3 = vcombine.high %v3242_v29, %v510_v0 }
 0x30a   : > { %672 = vrot.lane.b32.xlu1 %v3232_v26, %s3073_s15  ;;  %v546_v26 = vrot.slane %v532_v6, %v3249_v40 }
 0x30b   : > { %v523_v7 = vrot.slane %v515_v2, %v3249_v40  ;;  %v530_v8 = vrot.slane %v516_v3, %v3249_v40 }
 0x30d   : > { %v547_v11 = vcombine.low %v523_v7, %v539_v10  ;;  %v563_v12 = vcombine.low %v530_v8, %v546_v26  ;;  %v564_v13 = vcombine.high %v530_v8, %v546_v26 }
 0x30f   : > { %670 = vrot.lane.b32.xlu0 %v3224_v22, %s3073_s15  ;;  %v548_v22 = vcombine.high %v523_v7, %v539_v10  ;;  %v555_v14 = vrot.slane %v547_v11, %v3255_v50  ;;  %v571_v15 = vrot.slane %v563_v12, %v3255_v50  ;;  %v578_v9 = vrot.slane %v564_v13, %v3255_v50 }
 0x311   : > { %v562_v29 = vrot.slane %v548_v22, %v3255_v50  ;;  %v579_v18 = vcombine.high %v555_v14, %v3064_v5  ;;  %v581_v20 = vcombine.high %v571_v15, %v3064_v5  ;;  %v582_v21 = vcombine.high %v578_v9, %v3064_v5 }
 0x312   : > { %v2750_v31 = vpack.c.bf16 %v571_v15, %v555_v14 }
 0x313   : > { %v580_v19 = vcombine.high %v562_v29, %v3064_v5  ;;  %v2752_v25 = vpack.c.bf16 %v581_v20, %v579_v18  ;;  %v2751_v32 = vpack.c.bf16 %v578_v9, %v562_v29  ;;  %v769_v20 = vand.u32 127, %v520_v33 }
 0x314   : > { %v779_v42 = vrot.slane %v2750_v31, %v3249_v40 }
 0x315   : > { %v2753_v30 = vpack.c.bf16 %v582_v21, %v580_v19  ;;  %v804_v37 = vrot.slane %v2752_v25, %v3249_v40  ;;  %v787_v43 = vrot.slane %v2751_v32, %v3249_v40  ;;  %vm770_vm4 = vcmp.gt.s32.totalorder %v769_v20, %v3246_v36 }
 0x316   : > { %v771_v21 = vsel %vm770_vm4, -1e+30, %v3064_v5 }
 0x317   : > { %v812_v38 = vrot.slane %v2753_v30, %v3249_v40  ;;  %v788_v55 = vcombine.low %v779_v42, %v787_v43 }
 0x319   : > { %v813_v49 = vcombine.low %v804_v37, %v812_v38  ;;  %v795_v61 = vrot.slane %v788_v55, %v3255_v50 }
 0x31b   : > { %v820_v60 = vrot.slane %v813_v49, %v3255_v50  ;;  %v796_v26 = vcombine.high %v795_v61, %v3072_v46  ;;  %v825_v29 = vshrl.u32 %v795_v61, 16 }
 0x31d   : > { %v821_v6 = vcombine.high %v820_v60, %v3072_v46  ;;  %v824_v10 = vpack.i.b16 %v820_v60, %v795_v61  ;;  %v826_v14 = vshrl.u32 %v820_v60, 16  ;;  %v831_v18 = vshrl.u32 %v796_v26, 16 }
 0x31f   : > { %v830_v13 = vpack.i.b16 %v821_v6, %v796_v26  ;;  %v827_v9 = vpack.i.b16 %v826_v14, %v825_v29 }
 0x35c   : > { %v1134_v16 = vpop.trf.xlu0  ;;  %v1070_v17 = vpop.trf.xlu1 }
 0x35d   : > { %v1190_v39 = vcombine.low %v1070_v17, %v1134_v16  ;;  %v832_v17 = vshrl.u32 %v821_v6, 16 }
 0x35f   : > { %v1197_v51 = vrot.slane %v1190_v39, %v3249_v40  ;;  %v833_v19 = vpack.i.b16 %v832_v17, %v831_v18 }
 0x360   : > { %v1086_v23 = vpop.trf.xlu0  ;;  %v1150_v24 = vpop.trf.xlu1 }
 0x361   : > { %v1215_v41 = vcombine.low %v1086_v23, %v1150_v24 }
 0x363   : > { %v1222_v52 = vrot.slane %v1215_v41, %v3249_v40 }
 0x364   : > { %v1102_v34 = vpop.trf.xlu0  ;;  %v1118_v35 = vpop.trf.xlu1 }
 0x368   : > { %v1166_v44 = vpop.trf.xlu0  ;;  %v1182_v45 = vpop.trf.xlu1 }
 0x369   : > { %v1198_v47 = vcombine.low %v1102_v34, %v1166_v44  ;;  %v1223_v48 = vcombine.low %v1118_v35, %v1182_v45 }
 0x36b   : > { %v1205_v53 = vrot.slane %v1198_v47, %v3249_v40  ;;  %v1230_v54 = vrot.slane %v1223_v48, %v3249_v40 }
 0x36d   : > { %v1206_v56 = vcombine.low %v1197_v51, %v1205_v53  ;;  %v1231_v57 = vcombine.low %v1222_v52, %v1230_v54 }
 0x36f   : > { %v1213_v58 = vrot.slane %v1206_v56, %v3255_v50  ;;  %v1238_v59 = vrot.slane %v1231_v57, %v3255_v50 }
 0x371   : > { %v1242_v62 = vpack.i.b16 %v1238_v59, %v1213_v58  ;;  %v1214_v63 = vcombine.high %v1213_v58, %v3072_v46  ;;  %v1239_v0 = vcombine.high %v1238_v59, %v3072_v46  ;;  %v1243_v1 = vshrl.u32 %v1213_v58, 16 }
 0x372   : > { %v1244_v2 = vshrl.u32 %v1238_v59, 16 }
 0x373   : > { %v1258_v3 = vsel %vm1256_vm2, %v1242_v62, 0  ;;  %v1248_v4 = vpack.i.b16 %v1239_v0, %v1214_v63  ;;  %v1249_v11 = vshrl.u32 %v1214_v63, 16  ;;  %v1250_v22 = vshrl.u32 %v1239_v0, 16 }
 0x374   : > { %2830 = vmatpush3.bf16.msra.mxu1 %v1258_v3  ;;  %v1245_v7 = vpack.i.b16 %v1244_v2, %v1243_v1 }
 0x375   : > { %v1350_v8 = vsel %vm1256_vm2, %v1248_v4, 0  ;;  %2835 = vmatprep.subr.bf16.mxu1 %v3064_v5  ;;  %v1251_v15 = vpack.i.b16 %v1250_v22, %v1249_v11 }
 0x376   : > { %2842 = vmatpush3.bf16.msra.mxu0 %v1350_v8  ;;  %v1304_v12 = vsel %vm1256_vm2, %v1245_v7, 0 }
 0x377   : > { %2832 = vmatmul.mubr.msk.bf16.vlgmr.msra.gmra.mxu1 %vm1252_vm3, %v824_v10  ;;  %2853 = vmatprep.subr.bf16.mxu0 %v3064_v5  ;;  %v1396_v16 = vsel %vm1256_vm2, %v1251_v15, 0 }
 0x378   : > { %2836 = vmatpush3.bf16.msra.mxu1 %v1304_v12  ;;  %2837 = vmatprep.mubr.msk.bf16.mxu1 %vm3065_vm1, %v3064_v5 }
 0x379   : > { %2844 = vmatmul.mubr.msk.bf16.vlgmr.msra.gmra.mxu0 %vm1252_vm3, %v830_v13  ;;  %2847 = vmatprep.subr.bf16.mxu1 %v3064_v5 }
 0x37a   : > { %2855 = vmatprep.mubr.msk.bf16.mxu0 %vm3065_vm1, %v3064_v5 }
 0x37c   : > { %v673_v56 = vpop.permute.xlu1 %672 }
 0x37f   : > { %2838 = vmatmul.mubr.msk.bf16.vlgmr.msra.gmra.mxu1 %vm1252_vm3, %v827_v9 }
 0x380   : > { %2848 = vmatpush3.bf16.msra.mxu1 %v1396_v16  ;;  %2849 = vmatprep.mubr.msk.bf16.mxu1 %vm3065_vm1, %v3064_v5 }
 0x381   : > { %2859 = vmatprep.subr.bf16.mxu1 %v3064_v5  ;;  %v671_v54 = vpop.permute.xlu0 %670 }
 0x387   : > { %2850 = vmatmul.mubr.msk.bf16.vlgmr.msra.gmra.mxu1 %vm1252_vm3, %v833_v19 }
 0x388   : > { %2861 = vmatprep.mubr.msk.bf16.mxu1 %vm3065_vm1, %v3064_v5 }
 0x437   : > { %v1294_v23 = vpop.f32.mrf.mxu1 }
 0x438   : > { %v3343_v24 = vadd.f32 %v1294_v23, %v771_v21 }
 0x439   : > { %v2833_v25 = vpop.f32.mrf.mxu1  ;;  %v1386_v30 = vpop.f32.mrf.mxu0 }
 0x43a   : > { %v3345_v31 = vadd.f32 %v1386_v30, %v771_v21  ;;  %v1438_v32 = vsel %vm1252_vm3, %v3343_v24, -inf }
 0x43b   : > { %v2845_v34 = vpop.f32.mrf.mxu0  ;;  %1439 = vmax.xlane.f32.xlu0 %v1438_v32  ;;  %v1297_v35 = vpop.f32.mrf.mxu1 }
 0x43c   : > { %v1444_v33 = vsel %vm1252_vm3, %v3345_v31, -inf }
 0x43d   : > { %v2834_v37 = vpop.f32.mrf.mxu1  ;;  %v1389_v38 = vpop.f32.mrf.mxu0 }
 0x43f   : > { %v2846_v36 = vpop.f32.mrf.mxu0  ;;  %1445 = vmax.xlane.f32.xlu0 %v1444_v33  ;;  %v1340_v39 = vpop.f32.mrf.mxu1 }
 0x440   : > { %v3351_v41 = vadd.f32 %v1340_v39, %v771_v21 }
 0x441   : > { %v2839_v42 = vpop.f32.mrf.mxu1 }
 0x442   : > { %v1441_v43 = vsel %vm1252_vm3, %v3351_v41, -inf }
 0x443   : > { %1442 = vmax.xlane.f32.xlu1 %v1441_v43  ;;  %v1343_v44 = vpop.f32.mrf.mxu1 }
 0x445   : > { %v2840_v45 = vpop.f32.mrf.mxu1 }
 0x447   : > { %v1432_v47 = vpop.f32.mrf.mxu1 }
 0x448   : > { %v3359_v52 = vadd.f32 %v1432_v47, %v771_v21 }
 0x449   : > { %v2851_v48 = vpop.f32.mrf.mxu1 }
 0x44a   : > { %v1447_v53 = vsel %vm1252_vm3, %v3359_v52, -inf }
 0x44b   : > { %v1435_v49 = vpop.f32.mrf.mxu1 }
 0x44d   : > { %v2852_v51 = vpop.f32.mrf.mxu1 }
 0x454   : > { %674 = vrot.lane.b32.xlu1 %v3235_v27, %s3073_s15 }
 0x455   : > { %676 = vrot.lane.b32.xlu0 %v3238_v28, %s3073_s15 }
 0x478   : > { %1448 = vmax.xlane.f32.xlu1 %v1447_v53 }
 0x4c4   : > { %v3363_v55 = vpop.xlane.xlu0 %1439 }
 0x4c5   : > { %v1450_v53 = vsub.f32 %v3343_v24, %v3363_v55 }
 0x4c8   : > { %v3365_v57 = vpop.xlane.xlu0 %1445 }
 0x4cc   : > { %v677_v58 = vpop.permute.xlu0 %676  ;;  %v3367_v59 = vpop.xlane.xlu1 %1442 }
 0x4cd   : > { %v698_v60 = vcombine.low %v673_v56, %v677_v58  ;;  %v699_v27 = vcombine.high %v673_v56, %v677_v58  ;;  %v1451_v58 = vsub.f32 %v3351_v41, %v3367_v59 }
 0x4cf   : > { %v706_v63 = vrot.slane %v698_v60, %v3249_v40  ;;  %v713_v0 = vrot.slane %v699_v27, %v3249_v40 }
 0x4d0   : > { %v675_v61 = vpop.permute.xlu1 %674 }
 0x4d1   : > { %v682_v62 = vcombine.low %v671_v54, %v675_v61  ;;  %v683_v28 = vcombine.high %v671_v54, %v675_v61 }
 0x4d3   : > { %v690_v1 = vrot.slane %v682_v62, %v3249_v40  ;;  %v697_v2 = vrot.slane %v683_v28, %v3249_v40 }
 0x4d5   : > { %v714_v3 = vcombine.low %v690_v1, %v706_v63  ;;  %v715_v4 = vcombine.high %v690_v1, %v706_v63  ;;  %v730_v6 = vcombine.low %v697_v2, %v713_v0  ;;  %v731_v10 = vcombine.high %v697_v2, %v713_v0 }
 0x4d6   : > { %v1454_v0 = vmul.f32 1.442695, %v1450_v53  ;;  %v1452_v1 = vsub.f32 %v3345_v31, %v3365_v57 }
 0x4d7   : > { %v722_v7 = vrot.slane %v714_v3, %v3255_v50  ;;  %v729_v8 = vrot.slane %v715_v4, %v3255_v50  ;;  %v738_v12 = vrot.slane %v730_v6, %v3255_v50  ;;  %v745_v15 = vrot.slane %v731_v10, %v3255_v50 }
 0x4d8   : > { %v1456_v3 = vmul.f32 1.442695, %v1451_v58  ;;  %2981 = vpow2.f32 %v1454_v0 }
 0x4d9   : > { %v1486_v26 = vpack.c.bf16 %v722_v7, %v722_v7  ;;  %v746_v11 = vcombine.high %v722_v7, %v3064_v5  ;;  %v747_v22 = vcombine.high %v729_v8, %v3064_v5  ;;  %v748_v29 = vcombine.high %v738_v12, %v3064_v5 }
 0x4da   : > { %v1488_v9 = vpack.c.bf16 %v729_v8, %v729_v8  ;;  %v749_v17 = vcombine.high %v745_v15, %v3064_v5  ;;  %v1490_v18 = vpack.c.bf16 %v738_v12, %v738_v12  ;;  %v1492_v20 = vpack.c.bf16 %v745_v15, %v745_v15 }
 0x4db   : > { %1494 = vxpose.xlu1.c.b16.start.end [1/1] (short) (narrow) %v1486_v26, 16  ;;  %v1487_v13 = vpack.c.bf16 %v746_v11, %v746_v11  ;;  %v1489_v14 = vpack.c.bf16 %v747_v22, %v747_v22  ;;  %v1491_v16 = vpack.c.bf16 %v748_v29, %v748_v29  ;;  %v1458_v7 = vmul.f32 1.442695, %v1452_v1 }
 0x4dc   : > { %v1493_v19 = vpack.c.bf16 %v749_v17, %v749_v17  ;;  %2983 = vpow2.f32 %v1456_v3 }
 0x4dd   : > { %1510 = vxpose.xlu0.c.b16.start.end [1/1] (short) (narrow) %v1487_v13, 16  ;;  %2985 = vpow2.f32 %v1458_v7 }
 0x4df   : > { %1542 = vxpose.xlu1.c.b16.start.end [1/1] (short) (narrow) %v1489_v14, 16 }
 0x4e1   : > { %1526 = vxpose.xlu0.c.b16.start.end [1/1] (short) (narrow) %v1488_v9, 16 }
 0x4e3   : > { %1574 = vxpose.xlu1.c.b16.start.end [1/1] (short) (narrow) %v1491_v16, 16 }
 0x4e5   : > { %1558 = vxpose.xlu0.c.b16.start.end [1/1] (short) (narrow) %v1490_v18, 16 }
 0x4e7   : > { %1606 = vxpose.xlu1.c.b16.start.end [1/1] (short) (narrow) %v1493_v19, 16 }
 0x4e9   : > { %1590 = vxpose.xlu0.c.b16.start.end [1/1] (short) (narrow) %v1492_v20, 16 }
 0x501   : > { %v1449_v21 = vpop.xlane.xlu1 %1448 }
 0x502   : > { %v1453_v41 = vsub.f32 %v3359_v52, %v1449_v21  ;;  %v2982_v52 = vpop.eup %2981 }
 0x503   : > { %v2984_v22 = vpop.eup %2983  ;;  %v1462_v12 = vsel %vm1252_vm3, %v2982_v52, 0.0 }
 0x504   : > { %v1460_v31 = vmul.f32 1.442695, %v1453_v41  ;;  %v2986_v13 = vpop.eup %2985  ;;  %v1465_v14 = vsel %vm1252_vm3, %v2984_v22, 0.0 }
 0x505   : > { %v1468_v15 = vsel %vm1252_vm3, %v2986_v13, 0.0 }
 0x506   : > { %2987 = vpow2.f32 %v1460_v31 }
 0x513   : > { %v2988_v29 = vpop.eup %2987 }
 0x514   : > { %v1471_v9 = vsel %vm1252_vm3, %v2988_v29, 0.0 }
 0x53d   : > { %v1502_v23 = vpop.trf.xlu1 }
 0x53f   : > { %v1518_v25 = vpop.trf.xlu0 }
 0x541   : > { %v1550_v30 = vpop.trf.xlu1 }
 0x543   : > { %v1534_v32 = vpop.trf.xlu0 }
 0x545   : > { %v1582_v34 = vpop.trf.xlu1 }
 0x546   : > { %v1656_v37 = vcombine.low %v1518_v25, %v1582_v34 }
 0x547   : > { %v1566_v35 = vpop.trf.xlu0 }
 0x548   : > { %v1622_v33 = vcombine.low %v1502_v23, %v1566_v35  ;;  %v1663_v42 = vrot.slane %v1656_v37, %v3249_v40 }
 0x549   : > { %v1614_v38 = vpop.trf.xlu1 }
 0x54a   : > { %v1664_v36 = vcombine.low %v1550_v30, %v1614_v38  ;;  %v1629_v45 = vrot.slane %v1622_v33, %v3249_v40 }
 0x54b   : > { %v1598_v39 = vpop.trf.xlu0 }
 0x54c   : > { %v1671_v43 = vrot.slane %v1664_v36, %v3249_v40  ;;  %v1630_v44 = vcombine.low %v1534_v32, %v1598_v39 }
 0x54e   : > { %v1672_v47 = vcombine.low %v1663_v42, %v1671_v43  ;;  %v1637_v48 = vrot.slane %v1630_v44, %v3249_v40  ;;  %v1673_v60 = vcombine.high %v1663_v42, %v1671_v43 }
 0x550   : > { %v1638_v49 = vcombine.low %v1629_v45, %v1637_v48  ;;  %v1680_v51 = vrot.slane %v1672_v47, %v3255_v50  ;;  %v1639_v54 = vcombine.high %v1629_v45, %v1637_v48  ;;  %v1687_v6 = vrot.slane %v1673_v60, %v3255_v50 }
 0x552   : > { %v1646_v56 = vrot.slane %v1638_v49, %v3255_v50  ;;  %v1695_v27 = vshrl.u32 %v1680_v51, 16  ;;  %v1688_v63 = vcombine.high %v1680_v51, %v3072_v46  ;;  %v1653_v2 = vrot.slane %v1639_v54, %v3255_v50 }
 0x553   : > { %v1711_v26 = vshrl.u32 %v1687_v6, 16  ;;  %v1689_v17 = vcombine.high %v1687_v6, %v3072_v46 }
 0x554   : > { %v1692_v61 = vpack.i.b16 %v1680_v51, %v1646_v56  ;;  %v1694_v62 = vshrl.u32 %v1646_v56, 16  ;;  %v1654_v28 = vcombine.high %v1646_v56, %v3072_v46  ;;  %v1703_v4 = vshrl.u32 %v1688_v63, 16 }
 0x555   : > { %v1710_v10 = vshrl.u32 %v1653_v2, 16  ;;  %v1708_v57 = vpack.i.b16 %v1687_v6, %v1653_v2  ;;  %v1655_v16 = vcombine.high %v1653_v2, %v3072_v46  ;;  %v1719_v20 = vshrl.u32 %v1689_v17, 16 }
 0x556   : > { %1722 = vxpose.xlu0.c.b16.start.end [1/1] (short) (narrow) %v1692_v61, 16  ;;  %v1696_v24 = vpack.i.b16 %v1695_v27, %v1694_v62  ;;  %v1702_v55 = vshrl.u32 %v1654_v28, 16  ;;  %v1700_v59 = vpack.i.b16 %v1688_v63, %v1654_v28 }
 0x557   : > { %v1712_v11 = vpack.i.b16 %v1711_v26, %v1710_v10  ;;  %v1718_v18 = vshrl.u32 %v1655_v16, 16  ;;  %v1716_v19 = vpack.i.b16 %v1689_v17, %v1655_v16 }
 0x558   : > { %1738 = vxpose.xlu1.c.b16.start.end [1/1] (short) (narrow) %v1696_v24, 16  ;;  %v1704_v8 = vpack.i.b16 %v1703_v4, %v1702_v55 }
 0x559   : > { %v1720_v21 = vpack.i.b16 %v1719_v20, %v1718_v18 }
 0x55a   : > { %1754 = vxpose.xlu0.c.b16.start.end [1/1] (short) (narrow) %v1700_v59, 16 }
 0x55c   : > { %1770 = vxpose.xlu1.c.b16.start.end [1/1] (short) (narrow) %v1704_v8, 16 }
 0x55e   : > { %1786 = vxpose.xlu0.c.b16.start.end [1/1] (short) (narrow) %v1708_v57, 16 }
 0x560   : > { %1802 = vxpose.xlu1.c.b16.start.end [1/1] (short) (narrow) %v1712_v11, 16 }
 0x56b   : > { %1463 = vadd.xlane.f32.xlu0 %v1462_v12 }
 0x56d   : > { %1466 = vadd.xlane.f32.xlu1 %v1465_v14 }
 0x56f   : > { %1469 = vadd.xlane.f32.xlu0 %v1468_v15 }
 0x571   : > { %1472 = vadd.xlane.f32.xlu1 %v1471_v9 }
 0x59c   : > { %1818 = vxpose.xlu0.c.b16.start.end [1/1] (short) (narrow) %v1716_v19, 16 }
 0x59e   : > { %1834 = vxpose.xlu1.c.b16.start.end [1/1] (short) (narrow) %v1720_v21, 16 }
 0x5b8   : > { %v1730_v23 = vpop.trf.xlu0 }
 0x5ba   : > { %v1746_v25 = vpop.trf.xlu1 }
 0x5bc   : > { %v1762_v30 = vpop.trf.xlu0 }
 0x5be   : > { %v1778_v32 = vpop.trf.xlu1 }
 0x5c0   : > { %v1794_v34 = vpop.trf.xlu0 }
 0x5c1   : > { %v1850_v44 = vcombine.low %v1730_v23, %v1794_v34 }
 0x5c2   : > { %v1810_v35 = vpop.trf.xlu1 }
 0x5c3   : > { %v1875_v42 = vcombine.low %v1746_v25, %v1810_v35  ;;  %v1857_v58 = vrot.slane %v1850_v44, %v3249_v40 }
 0x5c5   : > { %v1882_v51 = vrot.slane %v1875_v42, %v3249_v40 }
 0x5f4   : > { %v1464_v37 = vpop.xlane.xlu0 %1463 }
 0x5f5   : > { %2989 = vrcp.f32 %v1464_v37 }
 0x5f6   : > { %v1467_v38 = vpop.xlane.xlu1 %1466 }
 0x5f7   : > { %2991 = vrcp.f32 %v1467_v38 }
 0x5f8   : > { %v1470_v33 = vpop.xlane.xlu0 %1469 }
 0x5f9   : > { %2993 = vrcp.f32 %v1470_v33 }
 0x5fa   : > { %v1473_v36 = vpop.xlane.xlu1 %1472 }
 0x5fb   : > { %2995 = vrcp.f32 %v1473_v36 }
 0x5fe   : > { %v1826_v39 = vpop.trf.xlu0 }
 0x5ff   : > { %v1858_v43 = vcombine.low %v1762_v30, %v1826_v39 }
 0x600   : > { %v1842_v45 = vpop.trf.xlu1 }
 0x601   : > { %v1883_v47 = vcombine.low %v1778_v32, %v1842_v45  ;;  %v1865_v49 = vrot.slane %v1858_v43, %v3249_v40 }
 0x602   : > { %v2990_v48 = vpop.eup %2989 }
 0x603   : > { %v1890_v53 = vrot.slane %v1883_v47, %v3249_v40  ;;  %v1478_v54 = vmul.f32 %v2990_v48, %v2982_v52  ;;  %v1866_v28 = vcombine.low %v1857_v58, %v1865_v49 }
 0x604   : > { %v2992_v56 = vpop.eup %2991 }
 0x605   : > { %v1891_v60 = vcombine.low %v1882_v51, %v1890_v53  ;;  %v1482_v27 = vpack.c.bf16 %v1478_v54, %v1478_v54  ;;  %v1479_v61 = vmul.f32 %v2992_v56, %v2984_v22  ;;  %v1873_v2 = vrot.slane %v1866_v28, %v3255_v50  ;;  %v2967_v56 = vld [vmem:[%s3572_s4 + $0x8] sm:$0xff]  }
 0x606   : > { %v2994_v62 = vpop.eup %2993 }
 0x607   : > { %v1916_v63 = vsel %vm1252_vm3, %v1482_v27, 0  ;;  %v1898_v1 = vrot.slane %v1891_v60, %v3255_v50  ;;  %v1483_v24 = vpack.c.bf16 %v1479_v61, %v1479_v61  ;;  %v1480_v55 = vmul.f32 %v2994_v62, %v2986_v13 }
 0x608   : > { %v2996_v0 = vpop.eup %2995  ;;  %2854 = vmatpush3.bf16.xpose.msra.mxu0 %v1916_v63  ;;  %v1903_v7 = vshrl.u32 %v1873_v2, 16  ;;  %v1874_v26 = vcombine.high %v1873_v2, %v3072_v46 }
 0x609   : > { %2865 = vmatprep.subr.bf16.mxu0 %v3064_v5  ;;  %v1962_v3 = vsel %vm1252_vm3, %v1483_v24, 0  ;;  %v1481_v41 = vmul.f32 %v2996_v0, %v2988_v29  ;;  %v1484_v59 = vpack.c.bf16 %v1480_v55, %v1480_v55  ;;  %v1904_v4 = vshrl.u32 %v1898_v1, 16 }
 0x60a   : > { %2860 = vmatpush3.bf16.xpose.msra.mxu1 %v1962_v3  ;;  %v1902_v6 = vpack.i.b16 %v1898_v1, %v1873_v2  ;;  %v1899_v31 = vcombine.high %v1898_v1, %v3072_v46  ;;  %v1909_v12 = vshrl.u32 %v1874_v26, 16  ;;  %v2968_v1 = vld [vmem:[%s3572_s4] sm:$0xff]  }
 0x60b   : > { %2871 = vmatprep.subr.bf16.mxu1 %v3064_v5  ;;  %v1485_v8 = vpack.c.bf16 %v1481_v41, %v1481_v41  ;;  %v2008_v10 = vsel %vm1252_vm3, %v1484_v59, 0  ;;  %v1905_v57 = vpack.i.b16 %v1904_v4, %v1903_v7 }
 0x60c   : > { %v1910_v52 = vshrl.u32 %v1899_v31, 16  ;;  %v1908_v22 = vpack.i.b16 %v1899_v31, %v1874_v26 }
 0x60d   : > { %v2054_v11 = vsel %vm1252_vm3, %v1485_v8, 0 }
 0x60e   : > { %v1911_v13 = vpack.i.b16 %v1910_v52, %v1909_v12 }
 0x60f   : > { %2856 = vmatmul.mubr.msk.bf16.vlgmr.msra.gmra.mxu0 %vm1252_vm3, %v1902_v6 }
 0x610   : > { %2866 = vmatpush3.bf16.xpose.msra.mxu0 %v2008_v10  ;;  %2867 = vmatprep.mubr.msk.bf16.mxu0 %vm3065_vm1, %v3064_v5 }
 0x611   : > { %2877 = vmatprep.subr.bf16.mxu0 %v3064_v5  ;;  %2862 = vmatmul.mubr.msk.bf16.vlgmr.msra.gmra.mxu1 %vm1252_vm3, %v1905_v57 }
 0x612   : > { %2872 = vmatpush3.bf16.xpose.msra.mxu1 %v2054_v11  ;;  %2873 = vmatprep.mubr.msk.bf16.mxu1 %vm3065_vm1, %v3064_v5 }
 0x613   : > { %2885 = vmatprep.subr.bf16.mxu1 %v3064_v5 }
 0x617   : > { %2868 = vmatmul.mubr.msk.bf16.vlgmr.msra.gmra.mxu0 %vm1252_vm3, %v1908_v22 }
 0x618   : > { %2881 = vmatprep.mubr.msk.bf16.mxu0 %vm3065_vm1, %v3064_v5  ;;  %2878 = vmatpush3.bf16.msra.mxu0 %v2967_v56  ;;  %v2973_v56 = vld [vmem:[%s3578_s10 + $0x28] sm:$0xff]  }
 0x619   : > { %2874 = vmatmul.mubr.msk.bf16.vlgmr.msra.gmra.mxu1 %vm1252_vm3, %v1911_v13  ;;  %2879 = vmatprep.subr.bf16.mxu0 %v3064_v5 }
 0x61a   : > { %2889 = vmatprep.mubr.msk.bf16.mxu1 %vm3065_vm1, %v3064_v5 }
 0x61c   : > { %2880 = vmatpush3.bf16.msra.mxu0 %v2968_v1 }
 0x61d   : > { %2893 = vmatprep.subr.bf16.mxu0 %v3064_v5 }
 0x6cf   : > { %v1952_v46 = vpop.f32.mrf.mxu0 }
 0x6d0   : > { %2096 = vxpose.xlu0.b32.start.end [1/1] (short) (narrow) %v1952_v46, 8 }
 0x6d1   : > { %v2857_v14 = vpop.f32.mrf.mxu0  ;;  %v1998_v29 = vpop.f32.mrf.mxu1 }
 0x6d2   : > { %2128 = vxpose.xlu1.b32.start.end [1/1] (short) (narrow) %v1998_v29, 8  ;;  %v2764_v29 = vld [vmem:[%s3573_s5] ss:$0 sm:$0xff] }
 0x6d3   : > { %v1955_v15 = vpop.f32.mrf.mxu0  ;;  %v2863_v9 = vpop.f32.mrf.mxu1 }
 0x6d5   : > { %v2858_v16 = vpop.f32.mrf.mxu0  ;;  %v2001_v17 = vpop.f32.mrf.mxu1 }
 0x6d6   : > { %v3464_v17 = vld [vmem:[%s3196_s19] sm:$0xff]  ;;  %s404_s19 = scalar_lea.vmem [#allocation2], %s2743_s17 }
 0x6d7   : > { %v2044_v18 = vpop.f32.mrf.mxu0  ;;  %v2864_v19 = vpop.f32.mrf.mxu1 }
 0x6d8   : > { %2160 = vxpose.xlu0.b32.start.end [1/1] (short) (narrow) %v2044_v18, 8 }
 0x6d9   : > { %v2869_v20 = vpop.f32.mrf.mxu0  ;;  %v2090_v21 = vpop.f32.mrf.mxu1 }
 0x6db   : > { %v2047_v23 = vpop.f32.mrf.mxu0  ;;  %v2875_v25 = vpop.f32.mrf.mxu1 }
 0x6dc   : > { %2192 = vxpose.xlu0.b32.start.end [1/1] (short) (narrow) %v2090_v21, 8 }
 0x6dd   : > { %v2870_v30 = vpop.f32.mrf.mxu0  ;;  %v2093_v32 = vpop.f32.mrf.mxu1 }
 0x6de   : > { %v2969_v30 = vld [vmem:[%s3576_s8 + $0x8] sm:$0xff]   ;;  %v2970_v32 = vld [vmem:[%s3576_s8] sm:$0xff]  }
 0x6df   : > { %v2876_v34 = vpop.f32.mrf.mxu1  ;;  %2886 = vmatpush3.bf16.msra.mxu1 %v2969_v30 }
 0x6e0   : > { %2887 = vmatprep.subr.bf16.mxu1 %v3064_v5 }
 0x6e3   : > { %2888 = vmatpush3.bf16.msra.mxu1 %v2970_v32 }
 0x74c   : > { %v2112_v35 = vpop.trf.xlu0 }
 0x74e   : > { %v2144_v38 = vpop.trf.xlu1 }
 0x754   : > { %v2176_v37 = vpop.trf.xlu0 }
 0x755   : > { %v2224_v33 = vcombine.low %v2112_v35, %v2176_v37  ;;  %v2225_v36 = vcombine.high %v2112_v35, %v2176_v37 }
 0x757   : > { %v2232_v44 = vrot.slane %v2224_v33, %v3249_v40  ;;  %v2239_v45 = vrot.slane %v2225_v36, %v3249_v40 }
 0x758   : > { %v2208_v39 = vpop.trf.xlu0 }
 0x759   : > { %v2240_v42 = vcombine.low %v2144_v38, %v2208_v39  ;;  %v2241_v43 = vcombine.high %v2144_v38, %v2208_v39 }
 0x75b   : > { %v2248_v47 = vrot.slane %v2240_v42, %v3249_v40  ;;  %v2255_v48 = vrot.slane %v2241_v43, %v3249_v40 }
 0x75d   : > { %v2256_v49 = vcombine.low %v2232_v44, %v2248_v47  ;;  %v2257_v51 = vcombine.high %v2232_v44, %v2248_v47  ;;  %v2272_v53 = vcombine.low %v2239_v45, %v2255_v48  ;;  %v2273_v54 = vcombine.high %v2239_v45, %v2255_v48  ;;  %v2768_v44 = vld [vmem:[%s3574_s6] ss:$0 sm:$0xff] }
 0x75e   : > { %v2769_v47 = vld [vmem:[%s3575_s7] ss:$0 sm:$0xff] }
 0x75f   : > { %v2264_v58 = vrot.slane %v2256_v49, %v3255_v50  ;;  %v2271_v60 = vrot.slane %v2257_v51, %v3255_v50  ;;  %v2280_v27 = vrot.slane %v2272_v53, %v3255_v50  ;;  %v2287_v61 = vrot.slane %v2273_v54, %v3255_v50  ;;  %v2971_v53 = vld [vmem:[%s3578_s10 + $0x38] sm:$0xff]   ;;  %v2972_v54 = vld [vmem:[%s3578_s10 + $0x30] sm:$0xff]  }
 0x761   : > { %v2292_v62 = vcombine.low %v2264_v58, %v2271_v60  ;;  %v2762_v28 = vcombine.high %v2264_v58, %v2271_v60  ;;  %v2308_v63 = vcombine.low %v2280_v27, %v2287_v61  ;;  %v2763_v0 = vcombine.high %v2280_v27, %v2287_v61  ;;  %v2974_v58 = vld [vmem:[%s3578_s10 + $0x20] sm:$0xff]   ;;  %v2975_v60 = vld [vmem:[%s3578_s10 + $0x18] sm:$0xff]   ;;  %v2976_v27 = vld [vmem:[%s3578_s10 + $0x10] sm:$0xff]  }
 0x762   : > { %v2977_v61 = vld [vmem:[%s3578_s10 + $0x8] sm:$0xff]  }
 0x763   : > { %v2299_v24 = vrot.slane %v2292_v62, %v3249_v40  ;;  %v2307_v55 = vrot.slane %v2762_v28, %v3249_v40  ;;  %v2315_v2 = vrot.slane %v2308_v63, %v3249_v40  ;;  %v2323_v3 = vrot.slane %v2763_v0, %v3249_v40  ;;  %v2978_v62 = vld [vmem:[%s3578_s10] sm:$0xff]  }
 0x764   : > { %v2770_v28 = vld [vmem:[%s3577_s9] ss:$0 sm:$0xff] }
 0x765   : > { %v2325_v41 = vcombine.high %v2299_v24, %v2307_v55  ;;  %v2341_v59 = vcombine.high %v2315_v2, %v2323_v3  ;;  %v2324_v4 = vcombine.low %v2299_v24, %v2307_v55  ;;  %v2340_v6 = vcombine.low %v2315_v2, %v2323_v3 }
 0x767   : > { %v2339_v7 = vrot.slane %v2325_v41, %v3255_v50  ;;  %v2355_v8 = vrot.slane %v2341_v59, %v3255_v50  ;;  %v2332_v10 = vrot.slane %v2324_v4, %v3255_v50  ;;  %v2348_v31 = vrot.slane %v2340_v6, %v3255_v50 }
 0x769   : > { %v2358_v57 = vcombine.low %v2339_v7, %v2355_v8  ;;  %v2357_v26 = vcombine.high %v2332_v10, %v2348_v31  ;;  %v2356_v11 = vcombine.low %v2332_v10, %v2348_v31  ;;  %v2359_v40 = vcombine.high %v2339_v7, %v2355_v8  ;;  %v2774_v31 = vld [vmem:[%s3579_s11] ss:$0 sm:$0xff] }
 0x76b   : > { %2365 = vrot.lane.b32.xlu1 %v2358_v57, %s3074_s26  ;;  %2361 = vrot.lane.b32.xlu0 %v2357_v26, %s3075_s28  ;;  %s2784_s26 = sshll.u32 %s3164_s25, 7  ;;  %s2680_s28 = sshll.u32 %s404_s19, 4  ;;  %s3528_s28 = int_to_ptr.vmem [resolvable:$true] %s2680_s28 }
 0x76c   : > { %s3526_s0 = scalar_lea.hbm %s3580_s12, %s2784_s26  ;;  %s2667_s25 = scalar_lea.sflag [#allocation3], %s402_s16 }
 0x76d   : > { %s3002_s17 = scalar_lea.vmem %s3528_s28, 128  ;;  %s3008_s26 = scalar_lea.vmem %s3007_s20, 256 }
 0x76e   : > { %p3003_p11 = scmp.ne.s32.totalorder %s3528_s28, %s3002_s17  ;;  %p3009_p0 = scmp.lt.s32.totalorder %s3528_s28, %s3007_s20 }
 0x76f   : > { %2369 = vrot.lane.b32.xlu1 %v2359_v40, %s3076_s29  ;;  %p3010_p1 = scmp.lt.s32.totalorder %s3008_s26, %s3002_s17 }
 0x770   : > { %p3004_p12 = pnand %p3003_p11, %p3181_p5 }
 0x771   : > { %p3011_p2 = por %p3010_p1, %p3009_p0 }
 0x772   : > { %p3005_p13 = pneg %p3004_p12 }
 0x774   : > { %p3012_p3 = pnand %p3011_p2, %p3005_p13 }
 0x7dd   : > { %v2366_v52 = vpop.permute.xlu1 %2365  ;;  %v2362_v22 = vpop.permute.xlu0 %2361 }
 0x7de   : > { %v2372_v12 = vsel %vm1252_vm3, %v2356_v11, %v2362_v22 }
 0x7df   : > { %v2374_v46 = vsel %vm2373_vm5, %v2372_v12, %v2366_v52 }
 0x7e1   : > { %v2370_v13 = vpop.permute.xlu1 %2369 }
 0x7e2   : > { %v2376_v50 = vsel %vm2375_vm6, %v2374_v46, %v2370_v13 }
 0x7e3   : > { %v2377_v14 = vpack.c.bf16 %v2376_v50, %v2376_v50 }
 0x7e5   : > { %2882 = vmatmul.mubr.msk.bf16.vlgmr.msra.gmra.mxu0 %vm413_vm0, %v2377_v14 }
 0x7e6   : > { %2909 = vmatprep.mubr.msk.bf16.mxu0 %vm3065_vm1, %v3064_v5  ;;  %2894 = vmatpush3.bf16.msra.mxu0 %v2971_v53 }
 0x7e7   : > { %2895 = vmatprep.subr.bf16.mxu0 %v3064_v5 }
 0x7ea   : > { %2896 = vmatpush3.bf16.msra.mxu0 %v2972_v54 }
 0x7eb   : > { %2897 = vmatprep.subr.bf16.mxu0 %v3064_v5 }
 0x7ee   : > { %2898 = vmatpush3.bf16.msra.mxu0 %v2973_v56 }
 0x7ef   : > { %2899 = vmatprep.subr.bf16.mxu0 %v3064_v5 }
 0x7f2   : > { %2900 = vmatpush3.bf16.msra.mxu0 %v2974_v58 }
 0x7f3   : > { %2901 = vmatprep.subr.bf16.mxu0 %v3064_v5 }
 0x7f6   : > { %2902 = vmatpush3.bf16.msra.mxu0 %v2975_v60 }
 0x7f7   : > { %2903 = vmatprep.subr.bf16.mxu0 %v3064_v5 }
 0x7fa   : > { %2904 = vmatpush3.bf16.msra.mxu0 %v2976_v27 }
 0x7fb   : > { %2905 = vmatprep.subr.bf16.mxu0 %v3064_v5 }
 0x7fe   : > { %2906 = vmatpush3.bf16.msra.mxu0 %v2977_v61 }
 0x7ff   : > { %2907 = vmatprep.subr.bf16.mxu0 %v3064_v5 }
 0x802   : > { %2908 = vmatpush3.bf16.msra.mxu0 %v2978_v62 }
 0x8a5   : > { %v2438_v15 = vpop.f32.mrf.mxu0 }
 0x8a6   : > { %v2439_v9 = vadd.f32 %v2764_v29, %v2438_v15 }
 0x8a7   : > { %v2883_v16 = vpop.f32.mrf.mxu0 }
 0x8a8   : > { %v2444_v18 = vadd.f32 %v3464_v17, %v2439_v9 }
 0x8a9   : > { %v2441_v19 = vpop.f32.mrf.mxu0 }
 0x8aa   : > { %v2447_v20 = vsel %vm413_vm0, %v2444_v18, 0.0  ;;  %v2451_v21 = vmul.f32 %v2444_v18, %v2444_v18 }
 0x8ab   : > { %2448 = vadd.xlane.f32.xlu1 %v2447_v20  ;;  %v2884_v23 = vpop.f32.mrf.mxu0 }
 0x8ac   : > { %v2452_v25 = vsel %vm413_vm0, %v2451_v21, 0.0 }
 0x8ad   : > { %2453 = vadd.xlane.f32.xlu0 %v2452_v25 }
 0x934   : > { %v2449_v34 = vpop.xlane.xlu1 %2448 }
 0x935   : > { %v2450_v35 = vmul.f32 0.03125, %v2449_v34 }
 0x936   : > { %v2454_v37 = vpop.xlane.xlu0 %2453 }
 0x937   : > { %v2456_v38 = vmul.f32 %v2450_v35, %v2450_v35  ;;  %v2455_v33 = vmul.f32 0.03125, %v2454_v37  ;;  %v2460_v42 = vsub.f32 %v2444_v18, %v2450_v35 }
 0x939   : > { %v2457_v36 = vsub.f32 %v2455_v33, %v2456_v38 }
 0x93b   : > { %v2458_v39 = vadd.f32 1e-05, %v2457_v36 }
 0x93d   : > { %2997 = vrsqrt.f32 %v2458_v39 }
 0x94a   : > { %v2998_v43 = vpop.eup %2997 }
 0x94b   : > { %v2461_v45 = vmul.f32 %v2998_v43, %v2460_v42 }
 0x94d   : > { %v2468_v48 = vmul.f32 %v2768_v44, %v2461_v45 }
 0x94f   : > { %v2475_v49 = vadd.f32 %v2769_v47, %v2468_v48 }
 0x951   : > { %v2476_v51 = vpack.c.bf16 %v2475_v49, %v2475_v49 }
 0x953   : > { %2890 = vmatmul.mubr.msk.bf16.vlgmr.msra.gmra.mxu1 %vm413_vm0, %v2476_v51 }
 0xa13   : > { %v2537_v63 = vpop.f32.mrf.mxu1 }
 0xa14   : > { %v2538_v0 = vadd.f32 %v2770_v28, %v2537_v63 }
 0xa15   : > { %v2891_v1 = vpop.f32.mrf.mxu1 }
 0xa16   : > { %v2544_v24 = vmul.f32 %v2538_v0, %v2538_v0  ;;  %v2543_v5 = vmul.f32 0.5, %v2538_v0 }
 0xa17   : > { %v2540_v55 = vpop.f32.mrf.mxu1 }
 0xa18   : > { %v2545_v2 = vmul.f32 %v2544_v24, %v2538_v0 }
 0xa19   : > { %v2892_v3 = vpop.f32.mrf.mxu1 }
 0xa1a   : > { %v2546_v41 = vmul.f32 0.044715, %v2545_v2 }
 0xa1c   : > { %v2547_v59 = vadd.f32 %v2546_v41, %v2538_v0 }
 0xa1e   : > { %v2548_v4 = vmul.f32 0.7978845, %v2547_v59 }
 0xa20   : > { %2999 = vtanh.f32 %v2548_v4 }
 0xa2d   : > { %v3000_v6 = vpop.eup %2999 }
 0xa2e   : > { %v2550_v7 = vadd.f32 1.0, %v3000_v6 }
 0xa30   : > { %v2551_v8 = vmul.f32 %v2550_v7, %v2543_v5 }
 0xa32   : > { %v2552_v10 = vpack.c.bf16 %v2551_v8, %v2551_v8 }
 0xa34   : > { %2910 = vmatmul.mubr.bf16.vlgmr.msra.gmra.mxu0 %v2552_v10 }
 0xaf4   : > { %v2658_v57 = vpop.f32.mrf.mxu0 }
 0xaf5   : > { %v2659_v26 = vadd.f32 %v2774_v31, %v2658_v57 }
 0xaf6   : > { %v2911_v11 = vpop.f32.mrf.mxu0 }
 0xaf7   : > { %v2664_v40 = vadd.f32 %v3464_v17, %v2659_v26 }
 0xaf8   : > { %v2661_v52 = vpop.f32.mrf.mxu0 }
 0xaf9   : > { %2665 = vst.msk [vmem:[%s404_s19] sm:$0xff] %vm413_vm0, %v2664_v40 }
 0xafa   : > { %v2912_v22 = vpop.f32.mrf.mxu0 }
 0xafb   : > { %3015 = shalt.err (!%p3012_p3)
}
 0xafc   : > { %s3016_s19 = scalar_lea.hbm %s3526_s0, 128  ;;  %s3020_s15 = scalar_lea.hbm %s3580_s12, 256 }
 0xafd   : > { %p3017_p4 = scmp.ne.s32.totalorder %s3526_s0, %s3016_s19  ;;  %p3021_p9 = scmp.lt.s32.totalorder %s3526_s0, %s3580_s12 }
 0xafe   : > { %p3022_p10 = scmp.lt.s32.totalorder %s3020_s15, %s3016_s19 }
 0xaff   : > { %p3018_p7 = pnand %p3017_p4, %p3181_p5 }
 0xb00   : > { %p3023_p11 = por %p3022_p10, %p3021_p9 }
 0xb01   : > { %p3019_p8 = pneg %p3018_p7 }
 0xb03   : > { %p3024_p12 = pnand %p3023_p11, %p3019_p8 }
 0xb05   : > { %3027 = shalt.err (!%p3024_p12)
}
 0xb06   : > { %2913 = dma.vmem_to_hbm [thread:$0]  (%p3181_p5), %s3528_s28, 128, %s3526_s0, %s2667_s25  }
 0xb07 PF: > { %p2919_p13 = scmp.ge.s32.totalorder %s3062_s24, 2  ;;  %s2692_s17 = sand.u32 1, %s3050_s21  }
 0xb08   : > { %s2693_s1 = scalar_lea.sflag [#allocation3], %s2692_s17 }
 0xb09   : > { %p2916_p0 = pnand %p2919_p13, %p3185_p6 }
 0xb0b   : > { %p2917_p1 = pneg %p2916_p0 }
 0xb0d   : > { %3045 = dma.done.wait (%p2917_p1), %s2693_s1, 128  }
 0xb0e   : > { %3047 = vsyncadd (%p2917_p1), %s2693_s1, 4294967168  ;;  %p22_p2 = scmp.ge.s32.totalorder %s3168_s27, 4   ;;  %s3587_s21 = smov %s3054_s22 }
 0xb0f   : > { %s3588_s22 = smov %s3058_s23  ;;  %s3589_s23 = smov %s3179_s30 }
 0xb10   : > { %s3590_s24 = smov %s3168_s27  ;;  %24 = sbr.rel (!%p22_p2) target bundleno = 6 (0x6), region = 103 }
 0xb15   :  { %2698 = vsyncpa [#allocation3], 1 }
 0xb16   :  { %2700 = vsyncpa [#allocation3 + $0x1], 1 }

</bundles_post_ra>
